<compile_context>
chip_gen: v7x
topology: tpu7x:2x2x1
jax: 0.10.0
libtpu: 0.0.40
codegen_flags: <defaults>
</compile_context>

<pallas_src>
import functools

import jax
import jax.numpy as jnp
from jax import lax
from jax.experimental import pallas as pl
from jax.experimental.pallas import tpu as pltpu

CIN = 8
COUT = 8
CT_PAD = 7          # conv_transpose padding
POOL_K = 7
POOL_PAD = 3
MIN_VALUE = 0.0
MAX_VALUE = float("inf")


def _kernel(x_ref, w_ref, b_ref, o_ref, *, min_value, max_value):
    # x_ref: (1, CIN, Ho, Wo)  VMEM
    # w_ref: (CIN, COUT)       SMEM (scalar reads)
    # b_ref: (COUT,)           SMEM
    # o_ref: (1, COUT, Ho, Wo) VMEM
    x = x_ref[0]                              # (CIN, Ho, Wo); leading-dim slices are free
    cin, ho, wo = x.shape
    cout = o_ref.shape[1]

    neg_inf = jnp.float32(-jnp.inf)
    min_f = jnp.float32(min_value)

    for co in range(cout):
        # ---- 1x1 conv_transpose channel mix: scalar-broadcast VPU FMAs ----
        # bias fused into the accumulator init.
        acc = jnp.full((ho, wo), b_ref[co], dtype=jnp.float32)
        for ci in range(cin):
            acc = acc + x[ci] * w_ref[ci, co]

        # ---- clamp_min / clamp_max ----
        acc = jnp.maximum(acc, min_f)
        if max_value != float("inf"):
            acc = jnp.minimum(acc, jnp.float32(max_value))

        # ---- separable MaxPool2d(7, stride=1, padding=3) ----
        # H (sublane) pass: pad halo along H only, 7 taps.
        ph = jnp.pad(acc, ((POOL_PAD, POOL_PAD), (0, 0)), constant_values=neg_inf)
        t = ph[0:ho, :]
        for dh in range(1, POOL_K):
            t = jnp.maximum(t, ph[dh:dh + ho, :])
        # W (lane) pass: pad halo along W only, 7 taps.
        pw = jnp.pad(t, ((0, 0), (POOL_PAD, POOL_PAD)), constant_values=neg_inf)
        out = pw[:, 0:wo]
        for dw in range(1, POOL_K):
            out = jnp.maximum(out, pw[:, dw:dw + wo])

        o_ref[0, co] = out.astype(o_ref.dtype)


def model_forward(x_nchw, w_pt, b, *, min_value=MIN_VALUE, max_value=MAX_VALUE):
    """x_nchw: (N, Cin, H, W) float32.  w_pt: (Cin, Cout, 1, 1).  b: (Cout,)."""
    n, cin, h, w = x_nchw.shape
    ho = h - 2 * CT_PAD
    wo = w - 2 * CT_PAD
    assert ho > 0 and wo > 0, "input spatial must exceed 2*padding of conv_transpose"

    # ConvTranspose2d(k=1, s=1, p=7) == pointwise channel matmul on the input
    # cropped by 7 pixels on each border. The crop is pure slicing glue.
    x_crop = x_nchw[:, :, CT_PAD:CT_PAD + ho, CT_PAD:CT_PAD + wo]   # (N, Cin, Ho, Wo)
    w_mat = w_pt[:, :, 0, 0]                                        # (Cin, Cout)

    kernel = functools.partial(_kernel, min_value=min_value, max_value=max_value)

    out_nchw = pl.pallas_call(
        kernel,
        out_shape=jax.ShapeDtypeStruct((n, COUT, ho, wo), jnp.float32),
        grid_spec=pltpu.PrefetchScalarGridSpec(
            num_scalar_prefetch=0,
            grid=(n,),
            in_specs=[
                pl.BlockSpec((1, cin, ho, wo), lambda i: (i, 0, 0, 0)),
                pl.BlockSpec(memory_space=pltpu.MemorySpace.SMEM),   # weights
                pl.BlockSpec(memory_space=pltpu.MemorySpace.SMEM),   # bias
            ],
            out_specs=pl.BlockSpec((1, COUT, ho, wo), lambda i: (i, 0, 0, 0)),
        ),
        compiler_params=pltpu.CompilerParams(
            dimension_semantics=("parallel",),
            vmem_limit_bytes=32 * 1024 * 1024,
        ),
    )(x_crop, w_mat, b)

    return out_nchw   # already NCHW, no transpose needed


def reference_forward(x_nchw, w_pt, b, *, min_value=MIN_VALUE, max_value=MAX_VALUE):
    """Pure-JAX reference for verification (handles non-square inputs)."""
    h, w = x_nchw.shape[2], x_nchw.shape[3]
    ho = h - 2 * CT_PAD
    wo = w - 2 * CT_PAD
    x_crop = x_nchw[:, :, CT_PAD:CT_PAD + ho, CT_PAD:CT_PAD + wo]
    # out[n,co,h,w] = sum_ci x[n,ci,h,w] * W[ci,co] + b[co]
    v = jnp.einsum("nchw,cd->ndhw", x_crop, w_pt[:, :, 0, 0]) + b[None, :, None, None]
    v = jnp.maximum(v, min_value)
    v = jnp.minimum(v, max_value)
    pooled = lax.reduce_window(
        v,
        -jnp.inf,
        lax.max,
        window_dimensions=(1, 1, POOL_K, POOL_K),
        window_strides=(1, 1, 1, 1),
        padding=((0, 0), (0, 0), (POOL_PAD, POOL_PAD), (POOL_PAD, POOL_PAD)),
    )
    return pooled


if __name__ == "__main__":
    key = jax.random.PRNGKey(0)
    kx, kw, kb = jax.random.split(key, 3)

    # Spatial must exceed 2*7 for the conv_transpose output to be non-empty:
    # 22x22 input -> 8x8 conv/pool output (matches the module's 8-everywhere theme).
    N, H, W = 2, 22, 22
    x = jax.random.normal(kx, (N, CIN, H, W), dtype=jnp.float32)

    # Deterministic parameter init (ConvTranspose2d weight layout: (Cin, Cout, 1, 1)).
    bound = 1.0 / (CIN ** 0.5)
    w_pt = jax.random.uniform(kw, (CIN, COUT, 1, 1), jnp.float32, -bound, bound)
    b = jax.random.uniform(kb, (COUT,), jnp.float32, -bound, bound)

    out = jax.block_until_ready(model_forward(x, w_pt, b))
    ref = jax.block_until_ready(reference_forward(x, w_pt, b))

    assert out.shape == (N, COUT, H - 2 * CT_PAD, W - 2 * CT_PAD), out.shape
    assert jnp.allclose(out, ref, atol=1e-5, rtol=1e-5), "mismatch vs reference"

    print("KERNEL_OK")
</pallas_src>

<mosaic_0001>
module attributes {stable_mosaic.version = 11 : i64} {
  func.func @_kernel(%arg0: i32, %arg1: memref<1x8x8x8xf32, #tpu.memory_space<vmem>>, %arg2: memref<8x8xf32, #tpu.memory_space<smem>>, %arg3: memref<8xf32, #tpu.memory_space<smem>>, %arg4: memref<1x8x8x8xf32, #tpu.memory_space<vmem>>) attributes {dimension_semantics = [#tpu.dimension_semantics<parallel>], iteration_bounds = array<i64: 2>, scalar_prefetch = 0 : i64, scratch_operands = 0 : i64, tpu.core_type = #tpu.core_type<tc>, window_params = [{transform_indices = @transform_0, window_bounds = array<i64: 1, 8, 8, 8>}, {transform_indices = @transform_1, window_bounds = array<i64: 8, 8>}, {transform_indices = @transform_2, window_bounds = array<i64: 8>}, {transform_indices = @transform_3, window_bounds = array<i64: 1, 8, 8, 8>}]} {
    %c0 = arith.constant 0 : index
    %c0_0 = arith.constant 0 : index
    %c0_1 = arith.constant 0 : index
    %c0_2 = arith.constant 0 : index
    %0 = vector.load %arg1[%c0, %c0_0, %c0_1, %c0_2] : memref<1x8x8x8xf32, #tpu.memory_space<vmem>>, vector<1x8x8x8xf32>
    %1 = vector.shape_cast %0 : vector<1x8x8x8xf32> to vector<8x8x8xf32>
    %c0_3 = arith.constant 0 : index
    %2 = memref.load %arg3[%c0_3] : memref<8xf32, #tpu.memory_space<smem>>
    %3 = vector.broadcast %2 : f32 to vector<8x8xf32>
    %4 = vector.extract_strided_slice %1 {offsets = [0, 0, 0], sizes = [1, 8, 8], strides = [1, 1, 1]} : vector<8x8x8xf32> to vector<1x8x8xf32>
    %5 = vector.shape_cast %4 : vector<1x8x8xf32> to vector<8x8xf32>
    %c0_4 = arith.constant 0 : index
    %c0_5 = arith.constant 0 : index
    %6 = memref.load %arg2[%c0_4, %c0_5] : memref<8x8xf32, #tpu.memory_space<smem>>
    %7 = vector.broadcast %6 : f32 to vector<8x8xf32>
    %8 = arith.mulf %5, %7 : vector<8x8xf32>
    %9 = arith.addf %3, %8 : vector<8x8xf32>
    %10 = vector.extract_strided_slice %1 {offsets = [1, 0, 0], sizes = [1, 8, 8], strides = [1, 1, 1]} : vector<8x8x8xf32> to vector<1x8x8xf32>
    %11 = vector.shape_cast %10 : vector<1x8x8xf32> to vector<8x8xf32>
    %c1 = arith.constant 1 : index
    %c0_6 = arith.constant 0 : index
    %12 = memref.load %arg2[%c1, %c0_6] : memref<8x8xf32, #tpu.memory_space<smem>>
    %13 = vector.broadcast %12 : f32 to vector<8x8xf32>
    %14 = arith.mulf %11, %13 : vector<8x8xf32>
    %15 = arith.addf %9, %14 : vector<8x8xf32>
    %16 = vector.extract_strided_slice %1 {offsets = [2, 0, 0], sizes = [1, 8, 8], strides = [1, 1, 1]} : vector<8x8x8xf32> to vector<1x8x8xf32>
    %17 = vector.shape_cast %16 : vector<1x8x8xf32> to vector<8x8xf32>
    %c2 = arith.constant 2 : index
    %c0_7 = arith.constant 0 : index
    %18 = memref.load %arg2[%c2, %c0_7] : memref<8x8xf32, #tpu.memory_space<smem>>
    %19 = vector.broadcast %18 : f32 to vector<8x8xf32>
    %20 = arith.mulf %17, %19 : vector<8x8xf32>
    %21 = arith.addf %15, %20 : vector<8x8xf32>
    %22 = vector.extract_strided_slice %1 {offsets = [3, 0, 0], sizes = [1, 8, 8], strides = [1, 1, 1]} : vector<8x8x8xf32> to vector<1x8x8xf32>
    %23 = vector.shape_cast %22 : vector<1x8x8xf32> to vector<8x8xf32>
    %c3 = arith.constant 3 : index
    %c0_8 = arith.constant 0 : index
    %24 = memref.load %arg2[%c3, %c0_8] : memref<8x8xf32, #tpu.memory_space<smem>>
    %25 = vector.broadcast %24 : f32 to vector<8x8xf32>
    %26 = arith.mulf %23, %25 : vector<8x8xf32>
    %27 = arith.addf %21, %26 : vector<8x8xf32>
    %28 = vector.extract_strided_slice %1 {offsets = [4, 0, 0], sizes = [1, 8, 8], strides = [1, 1, 1]} : vector<8x8x8xf32> to vector<1x8x8xf32>
    %29 = vector.shape_cast %28 : vector<1x8x8xf32> to vector<8x8xf32>
    %c4 = arith.constant 4 : index
    %c0_9 = arith.constant 0 : index
    %30 = memref.load %arg2[%c4, %c0_9] : memref<8x8xf32, #tpu.memory_space<smem>>
    %31 = vector.broadcast %30 : f32 to vector<8x8xf32>
    %32 = arith.mulf %29, %31 : vector<8x8xf32>
    %33 = arith.addf %27, %32 : vector<8x8xf32>
    %34 = vector.extract_strided_slice %1 {offsets = [5, 0, 0], sizes = [1, 8, 8], strides = [1, 1, 1]} : vector<8x8x8xf32> to vector<1x8x8xf32>
    %35 = vector.shape_cast %34 : vector<1x8x8xf32> to vector<8x8xf32>
    %c5 = arith.constant 5 : index
    %c0_10 = arith.constant 0 : index
    %36 = memref.load %arg2[%c5, %c0_10] : memref<8x8xf32, #tpu.memory_space<smem>>
    %37 = vector.broadcast %36 : f32 to vector<8x8xf32>
    %38 = arith.mulf %35, %37 : vector<8x8xf32>
    %39 = arith.addf %33, %38 : vector<8x8xf32>
    %40 = vector.extract_strided_slice %1 {offsets = [6, 0, 0], sizes = [1, 8, 8], strides = [1, 1, 1]} : vector<8x8x8xf32> to vector<1x8x8xf32>
    %41 = vector.shape_cast %40 : vector<1x8x8xf32> to vector<8x8xf32>
    %c6 = arith.constant 6 : index
    %c0_11 = arith.constant 0 : index
    %42 = memref.load %arg2[%c6, %c0_11] : memref<8x8xf32, #tpu.memory_space<smem>>
    %43 = vector.broadcast %42 : f32 to vector<8x8xf32>
    %44 = arith.mulf %41, %43 : vector<8x8xf32>
    %45 = arith.addf %39, %44 : vector<8x8xf32>
    %46 = vector.extract_strided_slice %1 {offsets = [7, 0, 0], sizes = [1, 8, 8], strides = [1, 1, 1]} : vector<8x8x8xf32> to vector<1x8x8xf32>
    %47 = vector.shape_cast %46 : vector<1x8x8xf32> to vector<8x8xf32>
    %c7 = arith.constant 7 : index
    %c0_12 = arith.constant 0 : index
    %48 = memref.load %arg2[%c7, %c0_12] : memref<8x8xf32, #tpu.memory_space<smem>>
    %49 = vector.broadcast %48 : f32 to vector<8x8xf32>
    %50 = arith.mulf %47, %49 : vector<8x8xf32>
    %51 = arith.addf %45, %50 : vector<8x8xf32>
    %cst = arith.constant 0.000000e+00 : f32
    %52 = vector.broadcast %cst : f32 to vector<8x8xf32>
    %53 = arith.maximumf %51, %52 : vector<8x8xf32>
    %cst_13 = arith.constant 0xFF800000 : f32
    %54 = vector.broadcast %cst_13 : f32 to vector<3x8xf32>
    %55 = tpu.concatenate %54, %53 in 0 : vector<3x8xf32>, vector<8x8xf32> -> vector<11x8xf32>
    %56 = vector.broadcast %cst_13 : f32 to vector<3x8xf32>
    %57 = tpu.concatenate %55, %56 in 0 : vector<11x8xf32>, vector<3x8xf32> -> vector<14x8xf32>
    %58 = vector.extract_strided_slice %57 {offsets = [0, 0], sizes = [8, 8], strides = [1, 1]} : vector<14x8xf32> to vector<8x8xf32>
    %59 = vector.extract_strided_slice %57 {offsets = [1, 0], sizes = [8, 8], strides = [1, 1]} : vector<14x8xf32> to vector<8x8xf32>
    %60 = arith.maximumf %58, %59 : vector<8x8xf32>
    %61 = vector.extract_strided_slice %57 {offsets = [2, 0], sizes = [8, 8], strides = [1, 1]} : vector<14x8xf32> to vector<8x8xf32>
    %62 = arith.maximumf %60, %61 : vector<8x8xf32>
    %63 = vector.extract_strided_slice %57 {offsets = [3, 0], sizes = [8, 8], strides = [1, 1]} : vector<14x8xf32> to vector<8x8xf32>
    %64 = arith.maximumf %62, %63 : vector<8x8xf32>
    %65 = vector.extract_strided_slice %57 {offsets = [4, 0], sizes = [8, 8], strides = [1, 1]} : vector<14x8xf32> to vector<8x8xf32>
    %66 = arith.maximumf %64, %65 : vector<8x8xf32>
    %67 = vector.extract_strided_slice %57 {offsets = [5, 0], sizes = [8, 8], strides = [1, 1]} : vector<14x8xf32> to vector<8x8xf32>
    %68 = arith.maximumf %66, %67 : vector<8x8xf32>
    %69 = vector.extract_strided_slice %57 {offsets = [6, 0], sizes = [8, 8], strides = [1, 1]} : vector<14x8xf32> to vector<8x8xf32>
    %70 = arith.maximumf %68, %69 : vector<8x8xf32>
    %cst_14 = arith.constant 0xFF800000 : f32
    %71 = vector.broadcast %cst_14 : f32 to vector<8x3xf32>
    %72 = tpu.concatenate %71, %70 in 1 : vector<8x3xf32>, vector<8x8xf32> -> vector<8x11xf32>
    %73 = vector.broadcast %cst_14 : f32 to vector<8x3xf32>
    %74 = tpu.concatenate %72, %73 in 1 : vector<8x11xf32>, vector<8x3xf32> -> vector<8x14xf32>
    %75 = vector.extract_strided_slice %74 {offsets = [0, 0], sizes = [8, 8], strides = [1, 1]} : vector<8x14xf32> to vector<8x8xf32>
    %76 = vector.extract_strided_slice %74 {offsets = [0, 1], sizes = [8, 8], strides = [1, 1]} : vector<8x14xf32> to vector<8x8xf32>
    %77 = arith.maximumf %75, %76 : vector<8x8xf32>
    %78 = vector.extract_strided_slice %74 {offsets = [0, 2], sizes = [8, 8], strides = [1, 1]} : vector<8x14xf32> to vector<8x8xf32>
    %79 = arith.maximumf %77, %78 : vector<8x8xf32>
    %80 = vector.extract_strided_slice %74 {offsets = [0, 3], sizes = [8, 8], strides = [1, 1]} : vector<8x14xf32> to vector<8x8xf32>
    %81 = arith.maximumf %79, %80 : vector<8x8xf32>
    %82 = vector.extract_strided_slice %74 {offsets = [0, 4], sizes = [8, 8], strides = [1, 1]} : vector<8x14xf32> to vector<8x8xf32>
    %83 = arith.maximumf %81, %82 : vector<8x8xf32>
    %84 = vector.extract_strided_slice %74 {offsets = [0, 5], sizes = [8, 8], strides = [1, 1]} : vector<8x14xf32> to vector<8x8xf32>
    %85 = arith.maximumf %83, %84 : vector<8x8xf32>
    %86 = vector.extract_strided_slice %74 {offsets = [0, 6], sizes = [8, 8], strides = [1, 1]} : vector<8x14xf32> to vector<8x8xf32>
    %87 = arith.maximumf %85, %86 : vector<8x8xf32>
    %c0_15 = arith.constant 0 : index
    %c0_16 = arith.constant 0 : index
    %c0_17 = arith.constant 0 : index
    %c0_18 = arith.constant 0 : index
    %88 = vector.load %arg4[%c0_15, %c0_16, %c0_17, %c0_18] : memref<1x8x8x8xf32, #tpu.memory_space<vmem>>, vector<1x1x8x8xf32>
    %89 = vector.shape_cast %88 : vector<1x1x8x8xf32> to vector<8x8xf32>
    %90 = vector.shape_cast %87 : vector<8x8xf32> to vector<1x1x8x8xf32>
    tpu.vector_store %arg4[%c0_15, %c0_16, %c0_17, %c0_18], %90 {strides = array<i32>} : memref<1x8x8x8xf32, #tpu.memory_space<vmem>>, vector<1x1x8x8xf32>,
    %c1_19 = arith.constant 1 : index
    %91 = memref.load %arg3[%c1_19] : memref<8xf32, #tpu.memory_space<smem>>
    %92 = vector.broadcast %91 : f32 to vector<8x8xf32>
    %93 = vector.extract_strided_slice %1 {offsets = [0, 0, 0], sizes = [1, 8, 8], strides = [1, 1, 1]} : vector<8x8x8xf32> to vector<1x8x8xf32>
    %94 = vector.shape_cast %93 : vector<1x8x8xf32> to vector<8x8xf32>
    %c0_20 = arith.constant 0 : index
    %c1_21 = arith.constant 1 : index
    %95 = memref.load %arg2[%c0_20, %c1_21] : memref<8x8xf32, #tpu.memory_space<smem>>
    %96 = vector.broadcast %95 : f32 to vector<8x8xf32>
    %97 = arith.mulf %94, %96 : vector<8x8xf32>
    %98 = arith.addf %92, %97 : vector<8x8xf32>
    %99 = vector.extract_strided_slice %1 {offsets = [1, 0, 0], sizes = [1, 8, 8], strides = [1, 1, 1]} : vector<8x8x8xf32> to vector<1x8x8xf32>
    %100 = vector.shape_cast %99 : vector<1x8x8xf32> to vector<8x8xf32>
    %c1_22 = arith.constant 1 : index
    %c1_23 = arith.constant 1 : index
    %101 = memref.load %arg2[%c1_22, %c1_23] : memref<8x8xf32, #tpu.memory_space<smem>>
    %102 = vector.broadcast %101 : f32 to vector<8x8xf32>
    %103 = arith.mulf %100, %102 : vector<8x8xf32>
    %104 = arith.addf %98, %103 : vector<8x8xf32>
    %105 = vector.extract_strided_slice %1 {offsets = [2, 0, 0], sizes = [1, 8, 8], strides = [1, 1, 1]} : vector<8x8x8xf32> to vector<1x8x8xf32>
    %106 = vector.shape_cast %105 : vector<1x8x8xf32> to vector<8x8xf32>
    %c2_24 = arith.constant 2 : index
    %c1_25 = arith.constant 1 : index
    %107 = memref.load %arg2[%c2_24, %c1_25] : memref<8x8xf32, #tpu.memory_space<smem>>
    %108 = vector.broadcast %107 : f32 to vector<8x8xf32>
    %109 = arith.mulf %106, %108 : vector<8x8xf32>
    %110 = arith.addf %104, %109 : vector<8x8xf32>
    %111 = vector.extract_strided_slice %1 {offsets = [3, 0, 0], sizes = [1, 8, 8], strides = [1, 1, 1]} : vector<8x8x8xf32> to vector<1x8x8xf32>
    %112 = vector.shape_cast %111 : vector<1x8x8xf32> to vector<8x8xf32>
    %c3_26 = arith.constant 3 : index
    %c1_27 = arith.constant 1 : index
    %113 = memref.load %arg2[%c3_26, %c1_27] : memref<8x8xf32, #tpu.memory_space<smem>>
    %114 = vector.broadcast %113 : f32 to vector<8x8xf32>
    %115 = arith.mulf %112, %114 : vector<8x8xf32>
    %116 = arith.addf %110, %115 : vector<8x8xf32>
    %117 = vector.extract_strided_slice %1 {offsets = [4, 0, 0], sizes = [1, 8, 8], strides = [1, 1, 1]} : vector<8x8x8xf32> to vector<1x8x8xf32>
    %118 = vector.shape_cast %117 : vector<1x8x8xf32> to vector<8x8xf32>
    %c4_28 = arith.constant 4 : index
    %c1_29 = arith.constant 1 : index
    %119 = memref.load %arg2[%c4_28, %c1_29] : memref<8x8xf32, #tpu.memory_space<smem>>
    %120 = vector.broadcast %119 : f32 to vector<8x8xf32>
    %121 = arith.mulf %118, %120 : vector<8x8xf32>
    %122 = arith.addf %116, %121 : vector<8x8xf32>
    %123 = vector.extract_strided_slice %1 {offsets = [5, 0, 0], sizes = [1, 8, 8], strides = [1, 1, 1]} : vector<8x8x8xf32> to vector<1x8x8xf32>
    %124 = vector.shape_cast %123 : vector<1x8x8xf32> to vector<8x8xf32>
    %c5_30 = arith.constant 5 : index
    %c1_31 = arith.constant 1 : index
    %125 = memref.load %arg2[%c5_30, %c1_31] : memref<8x8xf32, #tpu.memory_space<smem>>
    %126 = vector.broadcast %125 : f32 to vector<8x8xf32>
    %127 = arith.mulf %124, %126 : vector<8x8xf32>
    %128 = arith.addf %122, %127 : vector<8x8xf32>
    %129 = vector.extract_strided_slice %1 {offsets = [6, 0, 0], sizes = [1, 8, 8], strides = [1, 1, 1]} : vector<8x8x8xf32> to vector<1x8x8xf32>
    %130 = vector.shape_cast %129 : vector<1x8x8xf32> to vector<8x8xf32>
    %c6_32 = arith.constant 6 : index
    %c1_33 = arith.constant 1 : index
    %131 = memref.load %arg2[%c6_32, %c1_33] : memref<8x8xf32, #tpu.memory_space<smem>>
    %132 = vector.broadcast %131 : f32 to vector<8x8xf32>
    %133 = arith.mulf %130, %132 : vector<8x8xf32>
    %134 = arith.addf %128, %133 : vector<8x8xf32>
    %135 = vector.extract_strided_slice %1 {offsets = [7, 0, 0], sizes = [1, 8, 8], strides = [1, 1, 1]} : vector<8x8x8xf32> to vector<1x8x8xf32>
    %136 = vector.shape_cast %135 : vector<1x8x8xf32> to vector<8x8xf32>
    %c7_34 = arith.constant 7 : index
    %c1_35 = arith.constant 1 : index
    %137 = memref.load %arg2[%c7_34, %c1_35] : memref<8x8xf32, #tpu.memory_space<smem>>
    %138 = vector.broadcast %137 : f32 to vector<8x8xf32>
    %139 = arith.mulf %136, %138 : vector<8x8xf32>
    %140 = arith.addf %134, %139 : vector<8x8xf32>
    %cst_36 = arith.constant 0.000000e+00 : f32
    %141 = vector.broadcast %cst_36 : f32 to vector<8x8xf32>
    %142 = arith.maximumf %140, %141 : vector<8x8xf32>
    %cst_37 = arith.constant 0xFF800000 : f32
    %143 = vector.broadcast %cst_37 : f32 to vector<3x8xf32>
    %144 = tpu.concatenate %143, %142 in 0 : vector<3x8xf32>, vector<8x8xf32> -> vector<11x8xf32>
    %145 = vector.broadcast %cst_37 : f32 to vector<3x8xf32>
    %146 = tpu.concatenate %144, %145 in 0 : vector<11x8xf32>, vector<3x8xf32> -> vector<14x8xf32>
    %147 = vector.extract_strided_slice %146 {offsets = [0, 0], sizes = [8, 8], strides = [1, 1]} : vector<14x8xf32> to vector<8x8xf32>
    %148 = vector.extract_strided_slice %146 {offsets = [1, 0], sizes = [8, 8], strides = [1, 1]} : vector<14x8xf32> to vector<8x8xf32>
    %149 = arith.maximumf %147, %148 : vector<8x8xf32>
    %150 = vector.extract_strided_slice %146 {offsets = [2, 0], sizes = [8, 8], strides = [1, 1]} : vector<14x8xf32> to vector<8x8xf32>
    %151 = arith.maximumf %149, %150 : vector<8x8xf32>
    %152 = vector.extract_strided_slice %146 {offsets = [3, 0], sizes = [8, 8], strides = [1, 1]} : vector<14x8xf32> to vector<8x8xf32>
    %153 = arith.maximumf %151, %152 : vector<8x8xf32>
    %154 = vector.extract_strided_slice %146 {offsets = [4, 0], sizes = [8, 8], strides = [1, 1]} : vector<14x8xf32> to vector<8x8xf32>
    %155 = arith.maximumf %153, %154 : vector<8x8xf32>
    %156 = vector.extract_strided_slice %146 {offsets = [5, 0], sizes = [8, 8], strides = [1, 1]} : vector<14x8xf32> to vector<8x8xf32>
    %157 = arith.maximumf %155, %156 : vector<8x8xf32>
    %158 = vector.extract_strided_slice %146 {offsets = [6, 0], sizes = [8, 8], strides = [1, 1]} : vector<14x8xf32> to vector<8x8xf32>
    %159 = arith.maximumf %157, %158 : vector<8x8xf32>
    %cst_38 = arith.constant 0xFF800000 : f32
    %160 = vector.broadcast %cst_38 : f32 to vector<8x3xf32>
    %161 = tpu.concatenate %160, %159 in 1 : vector<8x3xf32>, vector<8x8xf32> -> vector<8x11xf32>
    %162 = vector.broadcast %cst_38 : f32 to vector<8x3xf32>
    %163 = tpu.concatenate %161, %162 in 1 : vector<8x11xf32>, vector<8x3xf32> -> vector<8x14xf32>
    %164 = vector.extract_strided_slice %163 {offsets = [0, 0], sizes = [8, 8], strides = [1, 1]} : vector<8x14xf32> to vector<8x8xf32>
    %165 = vector.extract_strided_slice %163 {offsets = [0, 1], sizes = [8, 8], strides = [1, 1]} : vector<8x14xf32> to vector<8x8xf32>
    %166 = arith.maximumf %164, %165 : vector<8x8xf32>
    %167 = vector.extract_strided_slice %163 {offsets = [0, 2], sizes = [8, 8], strides = [1, 1]} : vector<8x14xf32> to vector<8x8xf32>
    %168 = arith.maximumf %166, %167 : vector<8x8xf32>
    %169 = vector.extract_strided_slice %163 {offsets = [0, 3], sizes = [8, 8], strides = [1, 1]} : vector<8x14xf32> to vector<8x8xf32>
    %170 = arith.maximumf %168, %169 : vector<8x8xf32>
    %171 = vector.extract_strided_slice %163 {offsets = [0, 4], sizes = [8, 8], strides = [1, 1]} : vector<8x14xf32> to vector<8x8xf32>
    %172 = arith.maximumf %170, %171 : vector<8x8xf32>
    %173 = vector.extract_strided_slice %163 {offsets = [0, 5], sizes = [8, 8], strides = [1, 1]} : vector<8x14xf32> to vector<8x8xf32>
    %174 = arith.maximumf %172, %173 : vector<8x8xf32>
    %175 = vector.extract_strided_slice %163 {offsets = [0, 6], sizes = [8, 8], strides = [1, 1]} : vector<8x14xf32> to vector<8x8xf32>
    %176 = arith.maximumf %174, %175 : vector<8x8xf32>
    %c0_39 = arith.constant 0 : index
    %c1_40 = arith.constant 1 : index
    %c0_41 = arith.constant 0 : index
    %c0_42 = arith.constant 0 : index
    %177 = vector.load %arg4[%c0_39, %c1_40, %c0_41, %c0_42] : memref<1x8x8x8xf32, #tpu.memory_space<vmem>>, vector<1x1x8x8xf32>
    %178 = vector.shape_cast %177 : vector<1x1x8x8xf32> to vector<8x8xf32>
    %179 = vector.shape_cast %176 : vector<8x8xf32> to vector<1x1x8x8xf32>
    tpu.vector_store %arg4[%c0_39, %c1_40, %c0_41, %c0_42], %179 {strides = array<i32>} : memref<1x8x8x8xf32, #tpu.memory_space<vmem>>, vector<1x1x8x8xf32>,
    %c2_43 = arith.constant 2 : index
    %180 = memref.load %arg3[%c2_43] : memref<8xf32, #tpu.memory_space<smem>>
    %181 = vector.broadcast %180 : f32 to vector<8x8xf32>
    %182 = vector.extract_strided_slice %1 {offsets = [0, 0, 0], sizes = [1, 8, 8], strides = [1, 1, 1]} : vector<8x8x8xf32> to vector<1x8x8xf32>
    %183 = vector.shape_cast %182 : vector<1x8x8xf32> to vector<8x8xf32>
    %c0_44 = arith.constant 0 : index
    %c2_45 = arith.constant 2 : index
    %184 = memref.load %arg2[%c0_44, %c2_45] : memref<8x8xf32, #tpu.memory_space<smem>>
    %185 = vector.broadcast %184 : f32 to vector<8x8xf32>
    %186 = arith.mulf %183, %185 : vector<8x8xf32>
    %187 = arith.addf %181, %186 : vector<8x8xf32>
    %188 = vector.extract_strided_slice %1 {offsets = [1, 0, 0], sizes = [1, 8, 8], strides = [1, 1, 1]} : vector<8x8x8xf32> to vector<1x8x8xf32>
    %189 = vector.shape_cast %188 : vector<1x8x8xf32> to vector<8x8xf32>
    %c1_46 = arith.constant 1 : index
    %c2_47 = arith.constant 2 : index
    %190 = memref.load %arg2[%c1_46, %c2_47] : memref<8x8xf32, #tpu.memory_space<smem>>
    %191 = vector.broadcast %190 : f32 to vector<8x8xf32>
    %192 = arith.mulf %189, %191 : vector<8x8xf32>
    %193 = arith.addf %187, %192 : vector<8x8xf32>
    %194 = vector.extract_strided_slice %1 {offsets = [2, 0, 0], sizes = [1, 8, 8], strides = [1, 1, 1]} : vector<8x8x8xf32> to vector<1x8x8xf32>
    %195 = vector.shape_cast %194 : vector<1x8x8xf32> to vector<8x8xf32>
    %c2_48 = arith.constant 2 : index
    %c2_49 = arith.constant 2 : index
    %196 = memref.load %arg2[%c2_48, %c2_49] : memref<8x8xf32, #tpu.memory_space<smem>>
    %197 = vector.broadcast %196 : f32 to vector<8x8xf32>
    %198 = arith.mulf %195, %197 : vector<8x8xf32>
    %199 = arith.addf %193, %198 : vector<8x8xf32>
    %200 = vector.extract_strided_slice %1 {offsets = [3, 0, 0], sizes = [1, 8, 8], strides = [1, 1, 1]} : vector<8x8x8xf32> to vector<1x8x8xf32>
    %201 = vector.shape_cast %200 : vector<1x8x8xf32> to vector<8x8xf32>
    %c3_50 = arith.constant 3 : index
    %c2_51 = arith.constant 2 : index
    %202 = memref.load %arg2[%c3_50, %c2_51] : memref<8x8xf32, #tpu.memory_space<smem>>
    %203 = vector.broadcast %202 : f32 to vector<8x8xf32>
    %204 = arith.mulf %201, %203 : vector<8x8xf32>
    %205 = arith.addf %199, %204 : vector<8x8xf32>
    %206 = vector.extract_strided_slice %1 {offsets = [4, 0, 0], sizes = [1, 8, 8], strides = [1, 1, 1]} : vector<8x8x8xf32> to vector<1x8x8xf32>
    %207 = vector.shape_cast %206 : vector<1x8x8xf32> to vector<8x8xf32>
    %c4_52 = arith.constant 4 : index
    %c2_53 = arith.constant 2 : index
    %208 = memref.load %arg2[%c4_52, %c2_53] : memref<8x8xf32, #tpu.memory_space<smem>>
    %209 = vector.broadcast %208 : f32 to vector<8x8xf32>
    %210 = arith.mulf %207, %209 : vector<8x8xf32>
    %211 = arith.addf %205, %210 : vector<8x8xf32>
    %212 = vector.extract_strided_slice %1 {offsets = [5, 0, 0], sizes = [1, 8, 8], strides = [1, 1, 1]} : vector<8x8x8xf32> to vector<1x8x8xf32>
    %213 = vector.shape_cast %212 : vector<1x8x8xf32> to vector<8x8xf32>
    %c5_54 = arith.constant 5 : index
    %c2_55 = arith.constant 2 : index
    %214 = memref.load %arg2[%c5_54, %c2_55] : memref<8x8xf32, #tpu.memory_space<smem>>
    %215 = vector.broadcast %214 : f32 to vector<8x8xf32>
    %216 = arith.mulf %213, %215 : vector<8x8xf32>
    %217 = arith.addf %211, %216 : vector<8x8xf32>
    %218 = vector.extract_strided_slice %1 {offsets = [6, 0, 0], sizes = [1, 8, 8], strides = [1, 1, 1]} : vector<8x8x8xf32> to vector<1x8x8xf32>
    %219 = vector.shape_cast %218 : vector<1x8x8xf32> to vector<8x8xf32>
    %c6_56 = arith.constant 6 : index
    %c2_57 = arith.constant 2 : index
    %220 = memref.load %arg2[%c6_56, %c2_57] : memref<8x8xf32, #tpu.memory_space<smem>>
    %221 = vector.broadcast %220 : f32 to vector<8x8xf32>
    %222 = arith.mulf %219, %221 : vector<8x8xf32>
    %223 = arith.addf %217, %222 : vector<8x8xf32>
    %224 = vector.extract_strided_slice %1 {offsets = [7, 0, 0], sizes = [1, 8, 8], strides = [1, 1, 1]} : vector<8x8x8xf32> to vector<1x8x8xf32>
    %225 = vector.shape_cast %224 : vector<1x8x8xf32> to vector<8x8xf32>
    %c7_58 = arith.constant 7 : index
    %c2_59 = arith.constant 2 : index
    %226 = memref.load %arg2[%c7_58, %c2_59] : memref<8x8xf32, #tpu.memory_space<smem>>
    %227 = vector.broadcast %226 : f32 to vector<8x8xf32>
    %228 = arith.mulf %225, %227 : vector<8x8xf32>
    %229 = arith.addf %223, %228 : vector<8x8xf32>
    %cst_60 = arith.constant 0.000000e+00 : f32
    %230 = vector.broadcast %cst_60 : f32 to vector<8x8xf32>
    %231 = arith.maximumf %229, %230 : vector<8x8xf32>
    %cst_61 = arith.constant 0xFF800000 : f32
    %232 = vector.broadcast %cst_61 : f32 to vector<3x8xf32>
    %233 = tpu.concatenate %232, %231 in 0 : vector<3x8xf32>, vector<8x8xf32> -> vector<11x8xf32>
    %234 = vector.broadcast %cst_61 : f32 to vector<3x8xf32>
    %235 = tpu.concatenate %233, %234 in 0 : vector<11x8xf32>, vector<3x8xf32> -> vector<14x8xf32>
    %236 = vector.extract_strided_slice %235 {offsets = [0, 0], sizes = [8, 8], strides = [1, 1]} : vector<14x8xf32> to vector<8x8xf32>
    %237 = vector.extract_strided_slice %235 {offsets = [1, 0], sizes = [8, 8], strides = [1, 1]} : vector<14x8xf32> to vector<8x8xf32>
    %238 = arith.maximumf %236, %237 : vector<8x8xf32>
    %239 = vector.extract_strided_slice %235 {offsets = [2, 0], sizes = [8, 8], strides = [1, 1]} : vector<14x8xf32> to vector<8x8xf32>
    %240 = arith.maximumf %238, %239 : vector<8x8xf32>
    %241 = vector.extract_strided_slice %235 {offsets = [3, 0], sizes = [8, 8], strides = [1, 1]} : vector<14x8xf32> to vector<8x8xf32>
    %242 = arith.maximumf %240, %241 : vector<8x8xf32>
    %243 = vector.extract_strided_slice %235 {offsets = [4, 0], sizes = [8, 8], strides = [1, 1]} : vector<14x8xf32> to vector<8x8xf32>
    %244 = arith.maximumf %242, %243 : vector<8x8xf32>
    %245 = vector.extract_strided_slice %235 {offsets = [5, 0], sizes = [8, 8], strides = [1, 1]} : vector<14x8xf32> to vector<8x8xf32>
    %246 = arith.maximumf %244, %245 : vector<8x8xf32>
    %247 = vector.extract_strided_slice %235 {offsets = [6, 0], sizes = [8, 8], strides = [1, 1]} : vector<14x8xf32> to vector<8x8xf32>
    %248 = arith.maximumf %246, %247 : vector<8x8xf32>
    %cst_62 = arith.constant 0xFF800000 : f32
    %249 = vector.broadcast %cst_62 : f32 to vector<8x3xf32>
    %250 = tpu.concatenate %249, %248 in 1 : vector<8x3xf32>, vector<8x8xf32> -> vector<8x11xf32>
    %251 = vector.broadcast %cst_62 : f32 to vector<8x3xf32>
    %252 = tpu.concatenate %250, %251 in 1 : vector<8x11xf32>, vector<8x3xf32> -> vector<8x14xf32>
    %253 = vector.extract_strided_slice %252 {offsets = [0, 0], sizes = [8, 8], strides = [1, 1]} : vector<8x14xf32> to vector<8x8xf32>
    %254 = vector.extract_strided_slice %252 {offsets = [0, 1], sizes = [8, 8], strides = [1, 1]} : vector<8x14xf32> to vector<8x8xf32>
    %255 = arith.maximumf %253, %254 : vector<8x8xf32>
    %256 = vector.extract_strided_slice %252 {offsets = [0, 2], sizes = [8, 8], strides = [1, 1]} : vector<8x14xf32> to vector<8x8xf32>
    %257 = arith.maximumf %255, %256 : vector<8x8xf32>
    %258 = vector.extract_strided_slice %252 {offsets = [0, 3], sizes = [8, 8], strides = [1, 1]} : vector<8x14xf32> to vector<8x8xf32>
    %259 = arith.maximumf %257, %258 : vector<8x8xf32>
    %260 = vector.extract_strided_slice %252 {offsets = [0, 4], sizes = [8, 8], strides = [1, 1]} : vector<8x14xf32> to vector<8x8xf32>
    %261 = arith.maximumf %259, %260 : vector<8x8xf32>
    %262 = vector.extract_strided_slice %252 {offsets = [0, 5], sizes = [8, 8], strides = [1, 1]} : vector<8x14xf32> to vector<8x8xf32>
    %263 = arith.maximumf %261, %262 : vector<8x8xf32>
    %264 = vector.extract_strided_slice %252 {offsets = [0, 6], sizes = [8, 8], strides = [1, 1]} : vector<8x14xf32> to vector<8x8xf32>
    %265 = arith.maximumf %263, %264 : vector<8x8xf32>
    %c0_63 = arith.constant 0 : index
    %c2_64 = arith.constant 2 : index
    %c0_65 = arith.constant 0 : index
    %c0_66 = arith.constant 0 : index
    %266 = vector.load %arg4[%c0_63, %c2_64, %c0_65, %c0_66] : memref<1x8x8x8xf32, #tpu.memory_space<vmem>>, vector<1x1x8x8xf32>
    %267 = vector.shape_cast %266 : vector<1x1x8x8xf32> to vector<8x8xf32>
    %268 = vector.shape_cast %265 : vector<8x8xf32> to vector<1x1x8x8xf32>
    tpu.vector_store %arg4[%c0_63, %c2_64, %c0_65, %c0_66], %268 {strides = array<i32>} : memref<1x8x8x8xf32, #tpu.memory_space<vmem>>, vector<1x1x8x8xf32>,
    %c3_67 = arith.constant 3 : index
    %269 = memref.load %arg3[%c3_67] : memref<8xf32, #tpu.memory_space<smem>>
    %270 = vector.broadcast %269 : f32 to vector<8x8xf32>
    %271 = vector.extract_strided_slice %1 {offsets = [0, 0, 0], sizes = [1, 8, 8], strides = [1, 1, 1]} : vector<8x8x8xf32> to vector<1x8x8xf32>
    %272 = vector.shape_cast %271 : vector<1x8x8xf32> to vector<8x8xf32>
    %c0_68 = arith.constant 0 : index
    %c3_69 = arith.constant 3 : index
    %273 = memref.load %arg2[%c0_68, %c3_69] : memref<8x8xf32, #tpu.memory_space<smem>>
    %274 = vector.broadcast %273 : f32 to vector<8x8xf32>
    %275 = arith.mulf %272, %274 : vector<8x8xf32>
    %276 = arith.addf %270, %275 : vector<8x8xf32>
    %277 = vector.extract_strided_slice %1 {offsets = [1, 0, 0], sizes = [1, 8, 8], strides = [1, 1, 1]} : vector<8x8x8xf32> to vector<1x8x8xf32>
    %278 = vector.shape_cast %277 : vector<1x8x8xf32> to vector<8x8xf32>
    %c1_70 = arith.constant 1 : index
    %c3_71 = arith.constant 3 : index
    %279 = memref.load %arg2[%c1_70, %c3_71] : memref<8x8xf32, #tpu.memory_space<smem>>
    %280 = vector.broadcast %279 : f32 to vector<8x8xf32>
    %281 = arith.mulf %278, %280 : vector<8x8xf32>
    %282 = arith.addf %276, %281 : vector<8x8xf32>
    %283 = vector.extract_strided_slice %1 {offsets = [2, 0, 0], sizes = [1, 8, 8], strides = [1, 1, 1]} : vector<8x8x8xf32> to vector<1x8x8xf32>
    %284 = vector.shape_cast %283 : vector<1x8x8xf32> to vector<8x8xf32>
    %c2_72 = arith.constant 2 : index
    %c3_73 = arith.constant 3 : index
    %285 = memref.load %arg2[%c2_72, %c3_73] : memref<8x8xf32, #tpu.memory_space<smem>>
    %286 = vector.broadcast %285 : f32 to vector<8x8xf32>
    %287 = arith.mulf %284, %286 : vector<8x8xf32>
    %288 = arith.addf %282, %287 : vector<8x8xf32>
    %289 = vector.extract_strided_slice %1 {offsets = [3, 0, 0], sizes = [1, 8, 8], strides = [1, 1, 1]} : vector<8x8x8xf32> to vector<1x8x8xf32>
    %290 = vector.shape_cast %289 : vector<1x8x8xf32> to vector<8x8xf32>
    %c3_74 = arith.constant 3 : index
    %c3_75 = arith.constant 3 : index
    %291 = memref.load %arg2[%c3_74, %c3_75] : memref<8x8xf32, #tpu.memory_space<smem>>
    %292 = vector.broadcast %291 : f32 to vector<8x8xf32>
    %293 = arith.mulf %290, %292 : vector<8x8xf32>
    %294 = arith.addf %288, %293 : vector<8x8xf32>
    %295 = vector.extract_strided_slice %1 {offsets = [4, 0, 0], sizes = [1, 8, 8], strides = [1, 1, 1]} : vector<8x8x8xf32> to vector<1x8x8xf32>
    %296 = vector.shape_cast %295 : vector<1x8x8xf32> to vector<8x8xf32>
    %c4_76 = arith.constant 4 : index
    %c3_77 = arith.constant 3 : index
    %297 = memref.load %arg2[%c4_76, %c3_77] : memref<8x8xf32, #tpu.memory_space<smem>>
    %298 = vector.broadcast %297 : f32 to vector<8x8xf32>
    %299 = arith.mulf %296, %298 : vector<8x8xf32>
    %300 = arith.addf %294, %299 : vector<8x8xf32>
    %301 = vector.extract_strided_slice %1 {offsets = [5, 0, 0], sizes = [1, 8, 8], strides = [1, 1, 1]} : vector<8x8x8xf32> to vector<1x8x8xf32>
    %302 = vector.shape_cast %301 : vector<1x8x8xf32> to vector<8x8xf32>
    %c5_78 = arith.constant 5 : index
    %c3_79 = arith.constant 3 : index
    %303 = memref.load %arg2[%c5_78, %c3_79] : memref<8x8xf32, #tpu.memory_space<smem>>
    %304 = vector.broadcast %303 : f32 to vector<8x8xf32>
    %305 = arith.mulf %302, %304 : vector<8x8xf32>
    %306 = arith.addf %300, %305 : vector<8x8xf32>
    %307 = vector.extract_strided_slice %1 {offsets = [6, 0, 0], sizes = [1, 8, 8], strides = [1, 1, 1]} : vector<8x8x8xf32> to vector<1x8x8xf32>
    %308 = vector.shape_cast %307 : vector<1x8x8xf32> to vector<8x8xf32>
    %c6_80 = arith.constant 6 : index
    %c3_81 = arith.constant 3 : index
    %309 = memref.load %arg2[%c6_80, %c3_81] : memref<8x8xf32, #tpu.memory_space<smem>>
    %310 = vector.broadcast %309 : f32 to vector<8x8xf32>
    %311 = arith.mulf %308, %310 : vector<8x8xf32>
    %312 = arith.addf %306, %311 : vector<8x8xf32>
    %313 = vector.extract_strided_slice %1 {offsets = [7, 0, 0], sizes = [1, 8, 8], strides = [1, 1, 1]} : vector<8x8x8xf32> to vector<1x8x8xf32>
    %314 = vector.shape_cast %313 : vector<1x8x8xf32> to vector<8x8xf32>
    %c7_82 = arith.constant 7 : index
    %c3_83 = arith.constant 3 : index
    %315 = memref.load %arg2[%c7_82, %c3_83] : memref<8x8xf32, #tpu.memory_space<smem>>
    %316 = vector.broadcast %315 : f32 to vector<8x8xf32>
    %317 = arith.mulf %314, %316 : vector<8x8xf32>
    %318 = arith.addf %312, %317 : vector<8x8xf32>
    %cst_84 = arith.constant 0.000000e+00 : f32
    %319 = vector.broadcast %cst_84 : f32 to vector<8x8xf32>
    %320 = arith.maximumf %318, %319 : vector<8x8xf32>
    %cst_85 = arith.constant 0xFF800000 : f32
    %321 = vector.broadcast %cst_85 : f32 to vector<3x8xf32>
    %322 = tpu.concatenate %321, %320 in 0 : vector<3x8xf32>, vector<8x8xf32> -> vector<11x8xf32>
    %323 = vector.broadcast %cst_85 : f32 to vector<3x8xf32>
    %324 = tpu.concatenate %322, %323 in 0 : vector<11x8xf32>, vector<3x8xf32> -> vector<14x8xf32>
    %325 = vector.extract_strided_slice %324 {offsets = [0, 0], sizes = [8, 8], strides = [1, 1]} : vector<14x8xf32> to vector<8x8xf32>
    %326 = vector.extract_strided_slice %324 {offsets = [1, 0], sizes = [8, 8], strides = [1, 1]} : vector<14x8xf32> to vector<8x8xf32>
    %327 = arith.maximumf %325, %326 : vector<8x8xf32>
    %328 = vector.extract_strided_slice %324 {offsets = [2, 0], sizes = [8, 8], strides = [1, 1]} : vector<14x8xf32> to vector<8x8xf32>
    %329 = arith.maximumf %327, %328 : vector<8x8xf32>
    %330 = vector.extract_strided_slice %324 {offsets = [3, 0], sizes = [8, 8], strides = [1, 1]} : vector<14x8xf32> to vector<8x8xf32>
    %331 = arith.maximumf %329, %330 : vector<8x8xf32>
    %332 = vector.extract_strided_slice %324 {offsets = [4, 0], sizes = [8, 8], strides = [1, 1]} : vector<14x8xf32> to vector<8x8xf32>
    %333 = arith.maximumf %331, %332 : vector<8x8xf32>
    %334 = vector.extract_strided_slice %324 {offsets = [5, 0], sizes = [8, 8], strides = [1, 1]} : vector<14x8xf32> to vector<8x8xf32>
    %335 = arith.maximumf %333, %334 : vector<8x8xf32>
    %336 = vector.extract_strided_slice %324 {offsets = [6, 0], sizes = [8, 8], strides = [1, 1]} : vector<14x8xf32> to vector<8x8xf32>
    %337 = arith.maximumf %335, %336 : vector<8x8xf32>
    %cst_86 = arith.constant 0xFF800000 : f32
    %338 = vector.broadcast %cst_86 : f32 to vector<8x3xf32>
    %339 = tpu.concatenate %338, %337 in 1 : vector<8x3xf32>, vector<8x8xf32> -> vector<8x11xf32>
    %340 = vector.broadcast %cst_86 : f32 to vector<8x3xf32>
    %341 = tpu.concatenate %339, %340 in 1 : vector<8x11xf32>, vector<8x3xf32> -> vector<8x14xf32>
    %342 = vector.extract_strided_slice %341 {offsets = [0, 0], sizes = [8, 8], strides = [1, 1]} : vector<8x14xf32> to vector<8x8xf32>
    %343 = vector.extract_strided_slice %341 {offsets = [0, 1], sizes = [8, 8], strides = [1, 1]} : vector<8x14xf32> to vector<8x8xf32>
    %344 = arith.maximumf %342, %343 : vector<8x8xf32>
    %345 = vector.extract_strided_slice %341 {offsets = [0, 2], sizes = [8, 8], strides = [1, 1]} : vector<8x14xf32> to vector<8x8xf32>
    %346 = arith.maximumf %344, %345 : vector<8x8xf32>
    %347 = vector.extract_strided_slice %341 {offsets = [0, 3], sizes = [8, 8], strides = [1, 1]} : vector<8x14xf32> to vector<8x8xf32>
    %348 = arith.maximumf %346, %347 : vector<8x8xf32>
    %349 = vector.extract_strided_slice %341 {offsets = [0, 4], sizes = [8, 8], strides = [1, 1]} : vector<8x14xf32> to vector<8x8xf32>
    %350 = arith.maximumf %348, %349 : vector<8x8xf32>
    %351 = vector.extract_strided_slice %341 {offsets = [0, 5], sizes = [8, 8], strides = [1, 1]} : vector<8x14xf32> to vector<8x8xf32>
    %352 = arith.maximumf %350, %351 : vector<8x8xf32>
    %353 = vector.extract_strided_slice %341 {offsets = [0, 6], sizes = [8, 8], strides = [1, 1]} : vector<8x14xf32> to vector<8x8xf32>
    %354 = arith.maximumf %352, %353 : vector<8x8xf32>
    %c0_87 = arith.constant 0 : index
    %c3_88 = arith.constant 3 : index
    %c0_89 = arith.constant 0 : index
    %c0_90 = arith.constant 0 : index
    %355 = vector.load %arg4[%c0_87, %c3_88, %c0_89, %c0_90] : memref<1x8x8x8xf32, #tpu.memory_space<vmem>>, vector<1x1x8x8xf32>
    %356 = vector.shape_cast %355 : vector<1x1x8x8xf32> to vector<8x8xf32>
    %357 = vector.shape_cast %354 : vector<8x8xf32> to vector<1x1x8x8xf32>
    tpu.vector_store %arg4[%c0_87, %c3_88, %c0_89, %c0_90], %357 {strides = array<i32>} : memref<1x8x8x8xf32, #tpu.memory_space<vmem>>, vector<1x1x8x8xf32>,
    %c4_91 = arith.constant 4 : index
    %358 = memref.load %arg3[%c4_91] : memref<8xf32, #tpu.memory_space<smem>>
    %359 = vector.broadcast %358 : f32 to vector<8x8xf32>
    %360 = vector.extract_strided_slice %1 {offsets = [0, 0, 0], sizes = [1, 8, 8], strides = [1, 1, 1]} : vector<8x8x8xf32> to vector<1x8x8xf32>
    %361 = vector.shape_cast %360 : vector<1x8x8xf32> to vector<8x8xf32>
    %c0_92 = arith.constant 0 : index
    %c4_93 = arith.constant 4 : index
    %362 = memref.load %arg2[%c0_92, %c4_93] : memref<8x8xf32, #tpu.memory_space<smem>>
    %363 = vector.broadcast %362 : f32 to vector<8x8xf32>
    %364 = arith.mulf %361, %363 : vector<8x8xf32>
    %365 = arith.addf %359, %364 : vector<8x8xf32>
    %366 = vector.extract_strided_slice %1 {offsets = [1, 0, 0], sizes = [1, 8, 8], strides = [1, 1, 1]} : vector<8x8x8xf32> to vector<1x8x8xf32>
    %367 = vector.shape_cast %366 : vector<1x8x8xf32> to vector<8x8xf32>
    %c1_94 = arith.constant 1 : index
    %c4_95 = arith.constant 4 : index
    %368 = memref.load %arg2[%c1_94, %c4_95] : memref<8x8xf32, #tpu.memory_space<smem>>
    %369 = vector.broadcast %368 : f32 to vector<8x8xf32>
    %370 = arith.mulf %367, %369 : vector<8x8xf32>
    %371 = arith.addf %365, %370 : vector<8x8xf32>
    %372 = vector.extract_strided_slice %1 {offsets = [2, 0, 0], sizes = [1, 8, 8], strides = [1, 1, 1]} : vector<8x8x8xf32> to vector<1x8x8xf32>
    %373 = vector.shape_cast %372 : vector<1x8x8xf32> to vector<8x8xf32>
    %c2_96 = arith.constant 2 : index
    %c4_97 = arith.constant 4 : index
    %374 = memref.load %arg2[%c2_96, %c4_97] : memref<8x8xf32, #tpu.memory_space<smem>>
    %375 = vector.broadcast %374 : f32 to vector<8x8xf32>
    %376 = arith.mulf %373, %375 : vector<8x8xf32>
    %377 = arith.addf %371, %376 : vector<8x8xf32>
    %378 = vector.extract_strided_slice %1 {offsets = [3, 0, 0], sizes = [1, 8, 8], strides = [1, 1, 1]} : vector<8x8x8xf32> to vector<1x8x8xf32>
    %379 = vector.shape_cast %378 : vector<1x8x8xf32> to vector<8x8xf32>
    %c3_98 = arith.constant 3 : index
    %c4_99 = arith.constant 4 : index
    %380 = memref.load %arg2[%c3_98, %c4_99] : memref<8x8xf32, #tpu.memory_space<smem>>
    %381 = vector.broadcast %380 : f32 to vector<8x8xf32>
    %382 = arith.mulf %379, %381 : vector<8x8xf32>
    %383 = arith.addf %377, %382 : vector<8x8xf32>
    %384 = vector.extract_strided_slice %1 {offsets = [4, 0, 0], sizes = [1, 8, 8], strides = [1, 1, 1]} : vector<8x8x8xf32> to vector<1x8x8xf32>
    %385 = vector.shape_cast %384 : vector<1x8x8xf32> to vector<8x8xf32>
    %c4_100 = arith.constant 4 : index
    %c4_101 = arith.constant 4 : index
    %386 = memref.load %arg2[%c4_100, %c4_101] : memref<8x8xf32, #tpu.memory_space<smem>>
    %387 = vector.broadcast %386 : f32 to vector<8x8xf32>
    %388 = arith.mulf %385, %387 : vector<8x8xf32>
    %389 = arith.addf %383, %388 : vector<8x8xf32>
    %390 = vector.extract_strided_slice %1 {offsets = [5, 0, 0], sizes = [1, 8, 8], strides = [1, 1, 1]} : vector<8x8x8xf32> to vector<1x8x8xf32>
    %391 = vector.shape_cast %390 : vector<1x8x8xf32> to vector<8x8xf32>
    %c5_102 = arith.constant 5 : index
    %c4_103 = arith.constant 4 : index
    %392 = memref.load %arg2[%c5_102, %c4_103] : memref<8x8xf32, #tpu.memory_space<smem>>
    %393 = vector.broadcast %392 : f32 to vector<8x8xf32>
    %394 = arith.mulf %391, %393 : vector<8x8xf32>
    %395 = arith.addf %389, %394 : vector<8x8xf32>
    %396 = vector.extract_strided_slice %1 {offsets = [6, 0, 0], sizes = [1, 8, 8], strides = [1, 1, 1]} : vector<8x8x8xf32> to vector<1x8x8xf32>
    %397 = vector.shape_cast %396 : vector<1x8x8xf32> to vector<8x8xf32>
    %c6_104 = arith.constant 6 : index
    %c4_105 = arith.constant 4 : index
    %398 = memref.load %arg2[%c6_104, %c4_105] : memref<8x8xf32, #tpu.memory_space<smem>>
    %399 = vector.broadcast %398 : f32 to vector<8x8xf32>
    %400 = arith.mulf %397, %399 : vector<8x8xf32>
    %401 = arith.addf %395, %400 : vector<8x8xf32>
    %402 = vector.extract_strided_slice %1 {offsets = [7, 0, 0], sizes = [1, 8, 8], strides = [1, 1, 1]} : vector<8x8x8xf32> to vector<1x8x8xf32>
    %403 = vector.shape_cast %402 : vector<1x8x8xf32> to vector<8x8xf32>
    %c7_106 = arith.constant 7 : index
    %c4_107 = arith.constant 4 : index
    %404 = memref.load %arg2[%c7_106, %c4_107] : memref<8x8xf32, #tpu.memory_space<smem>>
    %405 = vector.broadcast %404 : f32 to vector<8x8xf32>
    %406 = arith.mulf %403, %405 : vector<8x8xf32>
    %407 = arith.addf %401, %406 : vector<8x8xf32>
    %cst_108 = arith.constant 0.000000e+00 : f32
    %408 = vector.broadcast %cst_108 : f32 to vector<8x8xf32>
    %409 = arith.maximumf %407, %408 : vector<8x8xf32>
    %cst_109 = arith.constant 0xFF800000 : f32
    %410 = vector.broadcast %cst_109 : f32 to vector<3x8xf32>
    %411 = tpu.concatenate %410, %409 in 0 : vector<3x8xf32>, vector<8x8xf32> -> vector<11x8xf32>
    %412 = vector.broadcast %cst_109 : f32 to vector<3x8xf32>
    %413 = tpu.concatenate %411, %412 in 0 : vector<11x8xf32>, vector<3x8xf32> -> vector<14x8xf32>
    %414 = vector.extract_strided_slice %413 {offsets = [0, 0], sizes = [8, 8], strides = [1, 1]} : vector<14x8xf32> to vector<8x8xf32>
    %415 = vector.extract_strided_slice %413 {offsets = [1, 0], sizes = [8, 8], strides = [1, 1]} : vector<14x8xf32> to vector<8x8xf32>
    %416 = arith.maximumf %414, %415 : vector<8x8xf32>
    %417 = vector.extract_strided_slice %413 {offsets = [2, 0], sizes = [8, 8], strides = [1, 1]} : vector<14x8xf32> to vector<8x8xf32>
    %418 = arith.maximumf %416, %417 : vector<8x8xf32>
    %419 = vector.extract_strided_slice %413 {offsets = [3, 0], sizes = [8, 8], strides = [1, 1]} : vector<14x8xf32> to vector<8x8xf32>
    %420 = arith.maximumf %418, %419 : vector<8x8xf32>
    %421 = vector.extract_strided_slice %413 {offsets = [4, 0], sizes = [8, 8], strides = [1, 1]} : vector<14x8xf32> to vector<8x8xf32>
    %422 = arith.maximumf %420, %421 : vector<8x8xf32>
    %423 = vector.extract_strided_slice %413 {offsets = [5, 0], sizes = [8, 8], strides = [1, 1]} : vector<14x8xf32> to vector<8x8xf32>
    %424 = arith.maximumf %422, %423 : vector<8x8xf32>
    %425 = vector.extract_strided_slice %413 {offsets = [6, 0], sizes = [8, 8], strides = [1, 1]} : vector<14x8xf32> to vector<8x8xf32>
    %426 = arith.maximumf %424, %425 : vector<8x8xf32>
    %cst_110 = arith.constant 0xFF800000 : f32
    %427 = vector.broadcast %cst_110 : f32 to vector<8x3xf32>
    %428 = tpu.concatenate %427, %426 in 1 : vector<8x3xf32>, vector<8x8xf32> -> vector<8x11xf32>
    %429 = vector.broadcast %cst_110 : f32 to vector<8x3xf32>
    %430 = tpu.concatenate %428, %429 in 1 : vector<8x11xf32>, vector<8x3xf32> -> vector<8x14xf32>
    %431 = vector.extract_strided_slice %430 {offsets = [0, 0], sizes = [8, 8], strides = [1, 1]} : vector<8x14xf32> to vector<8x8xf32>
    %432 = vector.extract_strided_slice %430 {offsets = [0, 1], sizes = [8, 8], strides = [1, 1]} : vector<8x14xf32> to vector<8x8xf32>
    %433 = arith.maximumf %431, %432 : vector<8x8xf32>
    %434 = vector.extract_strided_slice %430 {offsets = [0, 2], sizes = [8, 8], strides = [1, 1]} : vector<8x14xf32> to vector<8x8xf32>
    %435 = arith.maximumf %433, %434 : vector<8x8xf32>
    %436 = vector.extract_strided_slice %430 {offsets = [0, 3], sizes = [8, 8], strides = [1, 1]} : vector<8x14xf32> to vector<8x8xf32>
    %437 = arith.maximumf %435, %436 : vector<8x8xf32>
    %438 = vector.extract_strided_slice %430 {offsets = [0, 4], sizes = [8, 8], strides = [1, 1]} : vector<8x14xf32> to vector<8x8xf32>
    %439 = arith.maximumf %437, %438 : vector<8x8xf32>
    %440 = vector.extract_strided_slice %430 {offsets = [0, 5], sizes = [8, 8], strides = [1, 1]} : vector<8x14xf32> to vector<8x8xf32>
    %441 = arith.maximumf %439, %440 : vector<8x8xf32>
    %442 = vector.extract_strided_slice %430 {offsets = [0, 6], sizes = [8, 8], strides = [1, 1]} : vector<8x14xf32> to vector<8x8xf32>
    %443 = arith.maximumf %441, %442 : vector<8x8xf32>
    %c0_111 = arith.constant 0 : index
    %c4_112 = arith.constant 4 : index
    %c0_113 = arith.constant 0 : index
    %c0_114 = arith.constant 0 : index
    %444 = vector.load %arg4[%c0_111, %c4_112, %c0_113, %c0_114] : memref<1x8x8x8xf32, #tpu.memory_space<vmem>>, vector<1x1x8x8xf32>
    %445 = vector.shape_cast %444 : vector<1x1x8x8xf32> to vector<8x8xf32>
    %446 = vector.shape_cast %443 : vector<8x8xf32> to vector<1x1x8x8xf32>
    tpu.vector_store %arg4[%c0_111, %c4_112, %c0_113, %c0_114], %446 {strides = array<i32>} : memref<1x8x8x8xf32, #tpu.memory_space<vmem>>, vector<1x1x8x8xf32>,
    %c5_115 = arith.constant 5 : index
    %447 = memref.load %arg3[%c5_115] : memref<8xf32, #tpu.memory_space<smem>>
    %448 = vector.broadcast %447 : f32 to vector<8x8xf32>
    %449 = vector.extract_strided_slice %1 {offsets = [0, 0, 0], sizes = [1, 8, 8], strides = [1, 1, 1]} : vector<8x8x8xf32> to vector<1x8x8xf32>
    %450 = vector.shape_cast %449 : vector<1x8x8xf32> to vector<8x8xf32>
    %c0_116 = arith.constant 0 : index
    %c5_117 = arith.constant 5 : index
    %451 = memref.load %arg2[%c0_116, %c5_117] : memref<8x8xf32, #tpu.memory_space<smem>>
    %452 = vector.broadcast %451 : f32 to vector<8x8xf32>
    %453 = arith.mulf %450, %452 : vector<8x8xf32>
    %454 = arith.addf %448, %453 : vector<8x8xf32>
    %455 = vector.extract_strided_slice %1 {offsets = [1, 0, 0], sizes = [1, 8, 8], strides = [1, 1, 1]} : vector<8x8x8xf32> to vector<1x8x8xf32>
    %456 = vector.shape_cast %455 : vector<1x8x8xf32> to vector<8x8xf32>
    %c1_118 = arith.constant 1 : index
    %c5_119 = arith.constant 5 : index
    %457 = memref.load %arg2[%c1_118, %c5_119] : memref<8x8xf32, #tpu.memory_space<smem>>
    %458 = vector.broadcast %457 : f32 to vector<8x8xf32>
    %459 = arith.mulf %456, %458 : vector<8x8xf32>
    %460 = arith.addf %454, %459 : vector<8x8xf32>
    %461 = vector.extract_strided_slice %1 {offsets = [2, 0, 0], sizes = [1, 8, 8], strides = [1, 1, 1]} : vector<8x8x8xf32> to vector<1x8x8xf32>
    %462 = vector.shape_cast %461 : vector<1x8x8xf32> to vector<8x8xf32>
    %c2_120 = arith.constant 2 : index
    %c5_121 = arith.constant 5 : index
    %463 = memref.load %arg2[%c2_120, %c5_121] : memref<8x8xf32, #tpu.memory_space<smem>>
    %464 = vector.broadcast %463 : f32 to vector<8x8xf32>
    %465 = arith.mulf %462, %464 : vector<8x8xf32>
    %466 = arith.addf %460, %465 : vector<8x8xf32>
    %467 = vector.extract_strided_slice %1 {offsets = [3, 0, 0], sizes = [1, 8, 8], strides = [1, 1, 1]} : vector<8x8x8xf32> to vector<1x8x8xf32>
    %468 = vector.shape_cast %467 : vector<1x8x8xf32> to vector<8x8xf32>
    %c3_122 = arith.constant 3 : index
    %c5_123 = arith.constant 5 : index
    %469 = memref.load %arg2[%c3_122, %c5_123] : memref<8x8xf32, #tpu.memory_space<smem>>
    %470 = vector.broadcast %469 : f32 to vector<8x8xf32>
    %471 = arith.mulf %468, %470 : vector<8x8xf32>
    %472 = arith.addf %466, %471 : vector<8x8xf32>
    %473 = vector.extract_strided_slice %1 {offsets = [4, 0, 0], sizes = [1, 8, 8], strides = [1, 1, 1]} : vector<8x8x8xf32> to vector<1x8x8xf32>
    %474 = vector.shape_cast %473 : vector<1x8x8xf32> to vector<8x8xf32>
    %c4_124 = arith.constant 4 : index
    %c5_125 = arith.constant 5 : index
    %475 = memref.load %arg2[%c4_124, %c5_125] : memref<8x8xf32, #tpu.memory_space<smem>>
    %476 = vector.broadcast %475 : f32 to vector<8x8xf32>
    %477 = arith.mulf %474, %476 : vector<8x8xf32>
    %478 = arith.addf %472, %477 : vector<8x8xf32>
    %479 = vector.extract_strided_slice %1 {offsets = [5, 0, 0], sizes = [1, 8, 8], strides = [1, 1, 1]} : vector<8x8x8xf32> to vector<1x8x8xf32>
    %480 = vector.shape_cast %479 : vector<1x8x8xf32> to vector<8x8xf32>
    %c5_126 = arith.constant 5 : index
    %c5_127 = arith.constant 5 : index
    %481 = memref.load %arg2[%c5_126, %c5_127] : memref<8x8xf32, #tpu.memory_space<smem>>
    %482 = vector.broadcast %481 : f32 to vector<8x8xf32>
    %483 = arith.mulf %480, %482 : vector<8x8xf32>
    %484 = arith.addf %478, %483 : vector<8x8xf32>
    %485 = vector.extract_strided_slice %1 {offsets = [6, 0, 0], sizes = [1, 8, 8], strides = [1, 1, 1]} : vector<8x8x8xf32> to vector<1x8x8xf32>
    %486 = vector.shape_cast %485 : vector<1x8x8xf32> to vector<8x8xf32>
    %c6_128 = arith.constant 6 : index
    %c5_129 = arith.constant 5 : index
    %487 = memref.load %arg2[%c6_128, %c5_129] : memref<8x8xf32, #tpu.memory_space<smem>>
    %488 = vector.broadcast %487 : f32 to vector<8x8xf32>
    %489 = arith.mulf %486, %488 : vector<8x8xf32>
    %490 = arith.addf %484, %489 : vector<8x8xf32>
    %491 = vector.extract_strided_slice %1 {offsets = [7, 0, 0], sizes = [1, 8, 8], strides = [1, 1, 1]} : vector<8x8x8xf32> to vector<1x8x8xf32>
    %492 = vector.shape_cast %491 : vector<1x8x8xf32> to vector<8x8xf32>
    %c7_130 = arith.constant 7 : index
    %c5_131 = arith.constant 5 : index
    %493 = memref.load %arg2[%c7_130, %c5_131] : memref<8x8xf32, #tpu.memory_space<smem>>
    %494 = vector.broadcast %493 : f32 to vector<8x8xf32>
    %495 = arith.mulf %492, %494 : vector<8x8xf32>
    %496 = arith.addf %490, %495 : vector<8x8xf32>
    %cst_132 = arith.constant 0.000000e+00 : f32
    %497 = vector.broadcast %cst_132 : f32 to vector<8x8xf32>
    %498 = arith.maximumf %496, %497 : vector<8x8xf32>
    %cst_133 = arith.constant 0xFF800000 : f32
    %499 = vector.broadcast %cst_133 : f32 to vector<3x8xf32>
    %500 = tpu.concatenate %499, %498 in 0 : vector<3x8xf32>, vector<8x8xf32> -> vector<11x8xf32>
    %501 = vector.broadcast %cst_133 : f32 to vector<3x8xf32>
    %502 = tpu.concatenate %500, %501 in 0 : vector<11x8xf32>, vector<3x8xf32> -> vector<14x8xf32>
    %503 = vector.extract_strided_slice %502 {offsets = [0, 0], sizes = [8, 8], strides = [1, 1]} : vector<14x8xf32> to vector<8x8xf32>
    %504 = vector.extract_strided_slice %502 {offsets = [1, 0], sizes = [8, 8], strides = [1, 1]} : vector<14x8xf32> to vector<8x8xf32>
    %505 = arith.maximumf %503, %504 : vector<8x8xf32>
    %506 = vector.extract_strided_slice %502 {offsets = [2, 0], sizes = [8, 8], strides = [1, 1]} : vector<14x8xf32> to vector<8x8xf32>
    %507 = arith.maximumf %505, %506 : vector<8x8xf32>
    %508 = vector.extract_strided_slice %502 {offsets = [3, 0], sizes = [8, 8], strides = [1, 1]} : vector<14x8xf32> to vector<8x8xf32>
    %509 = arith.maximumf %507, %508 : vector<8x8xf32>
    %510 = vector.extract_strided_slice %502 {offsets = [4, 0], sizes = [8, 8], strides = [1, 1]} : vector<14x8xf32> to vector<8x8xf32>
    %511 = arith.maximumf %509, %510 : vector<8x8xf32>
    %512 = vector.extract_strided_slice %502 {offsets = [5, 0], sizes = [8, 8], strides = [1, 1]} : vector<14x8xf32> to vector<8x8xf32>
    %513 = arith.maximumf %511, %512 : vector<8x8xf32>
    %514 = vector.extract_strided_slice %502 {offsets = [6, 0], sizes = [8, 8], strides = [1, 1]} : vector<14x8xf32> to vector<8x8xf32>
    %515 = arith.maximumf %513, %514 : vector<8x8xf32>
    %cst_134 = arith.constant 0xFF800000 : f32
    %516 = vector.broadcast %cst_134 : f32 to vector<8x3xf32>
    %517 = tpu.concatenate %516, %515 in 1 : vector<8x3xf32>, vector<8x8xf32> -> vector<8x11xf32>
    %518 = vector.broadcast %cst_134 : f32 to vector<8x3xf32>
    %519 = tpu.concatenate %517, %518 in 1 : vector<8x11xf32>, vector<8x3xf32> -> vector<8x14xf32>
    %520 = vector.extract_strided_slice %519 {offsets = [0, 0], sizes = [8, 8], strides = [1, 1]} : vector<8x14xf32> to vector<8x8xf32>
    %521 = vector.extract_strided_slice %519 {offsets = [0, 1], sizes = [8, 8], strides = [1, 1]} : vector<8x14xf32> to vector<8x8xf32>
    %522 = arith.maximumf %520, %521 : vector<8x8xf32>
    %523 = vector.extract_strided_slice %519 {offsets = [0, 2], sizes = [8, 8], strides = [1, 1]} : vector<8x14xf32> to vector<8x8xf32>
    %524 = arith.maximumf %522, %523 : vector<8x8xf32>
    %525 = vector.extract_strided_slice %519 {offsets = [0, 3], sizes = [8, 8], strides = [1, 1]} : vector<8x14xf32> to vector<8x8xf32>
    %526 = arith.maximumf %524, %525 : vector<8x8xf32>
    %527 = vector.extract_strided_slice %519 {offsets = [0, 4], sizes = [8, 8], strides = [1, 1]} : vector<8x14xf32> to vector<8x8xf32>
    %528 = arith.maximumf %526, %527 : vector<8x8xf32>
    %529 = vector.extract_strided_slice %519 {offsets = [0, 5], sizes = [8, 8], strides = [1, 1]} : vector<8x14xf32> to vector<8x8xf32>
    %530 = arith.maximumf %528, %529 : vector<8x8xf32>
    %531 = vector.extract_strided_slice %519 {offsets = [0, 6], sizes = [8, 8], strides = [1, 1]} : vector<8x14xf32> to vector<8x8xf32>
    %532 = arith.maximumf %530, %531 : vector<8x8xf32>
    %c0_135 = arith.constant 0 : index
    %c5_136 = arith.constant 5 : index
    %c0_137 = arith.constant 0 : index
    %c0_138 = arith.constant 0 : index
    %533 = vector.load %arg4[%c0_135, %c5_136, %c0_137, %c0_138] : memref<1x8x8x8xf32, #tpu.memory_space<vmem>>, vector<1x1x8x8xf32>
    %534 = vector.shape_cast %533 : vector<1x1x8x8xf32> to vector<8x8xf32>
    %535 = vector.shape_cast %532 : vector<8x8xf32> to vector<1x1x8x8xf32>
    tpu.vector_store %arg4[%c0_135, %c5_136, %c0_137, %c0_138], %535 {strides = array<i32>} : memref<1x8x8x8xf32, #tpu.memory_space<vmem>>, vector<1x1x8x8xf32>,
    %c6_139 = arith.constant 6 : index
    %536 = memref.load %arg3[%c6_139] : memref<8xf32, #tpu.memory_space<smem>>
    %537 = vector.broadcast %536 : f32 to vector<8x8xf32>
    %538 = vector.extract_strided_slice %1 {offsets = [0, 0, 0], sizes = [1, 8, 8], strides = [1, 1, 1]} : vector<8x8x8xf32> to vector<1x8x8xf32>
    %539 = vector.shape_cast %538 : vector<1x8x8xf32> to vector<8x8xf32>
    %c0_140 = arith.constant 0 : index
    %c6_141 = arith.constant 6 : index
    %540 = memref.load %arg2[%c0_140, %c6_141] : memref<8x8xf32, #tpu.memory_space<smem>>
    %541 = vector.broadcast %540 : f32 to vector<8x8xf32>
    %542 = arith.mulf %539, %541 : vector<8x8xf32>
    %543 = arith.addf %537, %542 : vector<8x8xf32>
    %544 = vector.extract_strided_slice %1 {offsets = [1, 0, 0], sizes = [1, 8, 8], strides = [1, 1, 1]} : vector<8x8x8xf32> to vector<1x8x8xf32>
    %545 = vector.shape_cast %544 : vector<1x8x8xf32> to vector<8x8xf32>
    %c1_142 = arith.constant 1 : index
    %c6_143 = arith.constant 6 : index
    %546 = memref.load %arg2[%c1_142, %c6_143] : memref<8x8xf32, #tpu.memory_space<smem>>
    %547 = vector.broadcast %546 : f32 to vector<8x8xf32>
    %548 = arith.mulf %545, %547 : vector<8x8xf32>
    %549 = arith.addf %543, %548 : vector<8x8xf32>
    %550 = vector.extract_strided_slice %1 {offsets = [2, 0, 0], sizes = [1, 8, 8], strides = [1, 1, 1]} : vector<8x8x8xf32> to vector<1x8x8xf32>
    %551 = vector.shape_cast %550 : vector<1x8x8xf32> to vector<8x8xf32>
    %c2_144 = arith.constant 2 : index
    %c6_145 = arith.constant 6 : index
    %552 = memref.load %arg2[%c2_144, %c6_145] : memref<8x8xf32, #tpu.memory_space<smem>>
    %553 = vector.broadcast %552 : f32 to vector<8x8xf32>
    %554 = arith.mulf %551, %553 : vector<8x8xf32>
    %555 = arith.addf %549, %554 : vector<8x8xf32>
    %556 = vector.extract_strided_slice %1 {offsets = [3, 0, 0], sizes = [1, 8, 8], strides = [1, 1, 1]} : vector<8x8x8xf32> to vector<1x8x8xf32>
    %557 = vector.shape_cast %556 : vector<1x8x8xf32> to vector<8x8xf32>
    %c3_146 = arith.constant 3 : index
    %c6_147 = arith.constant 6 : index
    %558 = memref.load %arg2[%c3_146, %c6_147] : memref<8x8xf32, #tpu.memory_space<smem>>
    %559 = vector.broadcast %558 : f32 to vector<8x8xf32>
    %560 = arith.mulf %557, %559 : vector<8x8xf32>
    %561 = arith.addf %555, %560 : vector<8x8xf32>
    %562 = vector.extract_strided_slice %1 {offsets = [4, 0, 0], sizes = [1, 8, 8], strides = [1, 1, 1]} : vector<8x8x8xf32> to vector<1x8x8xf32>
    %563 = vector.shape_cast %562 : vector<1x8x8xf32> to vector<8x8xf32>
    %c4_148 = arith.constant 4 : index
    %c6_149 = arith.constant 6 : index
    %564 = memref.load %arg2[%c4_148, %c6_149] : memref<8x8xf32, #tpu.memory_space<smem>>
    %565 = vector.broadcast %564 : f32 to vector<8x8xf32>
    %566 = arith.mulf %563, %565 : vector<8x8xf32>
    %567 = arith.addf %561, %566 : vector<8x8xf32>
    %568 = vector.extract_strided_slice %1 {offsets = [5, 0, 0], sizes = [1, 8, 8], strides = [1, 1, 1]} : vector<8x8x8xf32> to vector<1x8x8xf32>
    %569 = vector.shape_cast %568 : vector<1x8x8xf32> to vector<8x8xf32>
    %c5_150 = arith.constant 5 : index
    %c6_151 = arith.constant 6 : index
    %570 = memref.load %arg2[%c5_150, %c6_151] : memref<8x8xf32, #tpu.memory_space<smem>>
    %571 = vector.broadcast %570 : f32 to vector<8x8xf32>
    %572 = arith.mulf %569, %571 : vector<8x8xf32>
    %573 = arith.addf %567, %572 : vector<8x8xf32>
    %574 = vector.extract_strided_slice %1 {offsets = [6, 0, 0], sizes = [1, 8, 8], strides = [1, 1, 1]} : vector<8x8x8xf32> to vector<1x8x8xf32>
    %575 = vector.shape_cast %574 : vector<1x8x8xf32> to vector<8x8xf32>
    %c6_152 = arith.constant 6 : index
    %c6_153 = arith.constant 6 : index
    %576 = memref.load %arg2[%c6_152, %c6_153] : memref<8x8xf32, #tpu.memory_space<smem>>
    %577 = vector.broadcast %576 : f32 to vector<8x8xf32>
    %578 = arith.mulf %575, %577 : vector<8x8xf32>
    %579 = arith.addf %573, %578 : vector<8x8xf32>
    %580 = vector.extract_strided_slice %1 {offsets = [7, 0, 0], sizes = [1, 8, 8], strides = [1, 1, 1]} : vector<8x8x8xf32> to vector<1x8x8xf32>
    %581 = vector.shape_cast %580 : vector<1x8x8xf32> to vector<8x8xf32>
    %c7_154 = arith.constant 7 : index
    %c6_155 = arith.constant 6 : index
    %582 = memref.load %arg2[%c7_154, %c6_155] : memref<8x8xf32, #tpu.memory_space<smem>>
    %583 = vector.broadcast %582 : f32 to vector<8x8xf32>
    %584 = arith.mulf %581, %583 : vector<8x8xf32>
    %585 = arith.addf %579, %584 : vector<8x8xf32>
    %cst_156 = arith.constant 0.000000e+00 : f32
    %586 = vector.broadcast %cst_156 : f32 to vector<8x8xf32>
    %587 = arith.maximumf %585, %586 : vector<8x8xf32>
    %cst_157 = arith.constant 0xFF800000 : f32
    %588 = vector.broadcast %cst_157 : f32 to vector<3x8xf32>
    %589 = tpu.concatenate %588, %587 in 0 : vector<3x8xf32>, vector<8x8xf32> -> vector<11x8xf32>
    %590 = vector.broadcast %cst_157 : f32 to vector<3x8xf32>
    %591 = tpu.concatenate %589, %590 in 0 : vector<11x8xf32>, vector<3x8xf32> -> vector<14x8xf32>
    %592 = vector.extract_strided_slice %591 {offsets = [0, 0], sizes = [8, 8], strides = [1, 1]} : vector<14x8xf32> to vector<8x8xf32>
    %593 = vector.extract_strided_slice %591 {offsets = [1, 0], sizes = [8, 8], strides = [1, 1]} : vector<14x8xf32> to vector<8x8xf32>
    %594 = arith.maximumf %592, %593 : vector<8x8xf32>
    %595 = vector.extract_strided_slice %591 {offsets = [2, 0], sizes = [8, 8], strides = [1, 1]} : vector<14x8xf32> to vector<8x8xf32>
    %596 = arith.maximumf %594, %595 : vector<8x8xf32>
    %597 = vector.extract_strided_slice %591 {offsets = [3, 0], sizes = [8, 8], strides = [1, 1]} : vector<14x8xf32> to vector<8x8xf32>
    %598 = arith.maximumf %596, %597 : vector<8x8xf32>
    %599 = vector.extract_strided_slice %591 {offsets = [4, 0], sizes = [8, 8], strides = [1, 1]} : vector<14x8xf32> to vector<8x8xf32>
    %600 = arith.maximumf %598, %599 : vector<8x8xf32>
    %601 = vector.extract_strided_slice %591 {offsets = [5, 0], sizes = [8, 8], strides = [1, 1]} : vector<14x8xf32> to vector<8x8xf32>
    %602 = arith.maximumf %600, %601 : vector<8x8xf32>
    %603 = vector.extract_strided_slice %591 {offsets = [6, 0], sizes = [8, 8], strides = [1, 1]} : vector<14x8xf32> to vector<8x8xf32>
    %604 = arith.maximumf %602, %603 : vector<8x8xf32>
    %cst_158 = arith.constant 0xFF800000 : f32
    %605 = vector.broadcast %cst_158 : f32 to vector<8x3xf32>
    %606 = tpu.concatenate %605, %604 in 1 : vector<8x3xf32>, vector<8x8xf32> -> vector<8x11xf32>
    %607 = vector.broadcast %cst_158 : f32 to vector<8x3xf32>
    %608 = tpu.concatenate %606, %607 in 1 : vector<8x11xf32>, vector<8x3xf32> -> vector<8x14xf32>
    %609 = vector.extract_strided_slice %608 {offsets = [0, 0], sizes = [8, 8], strides = [1, 1]} : vector<8x14xf32> to vector<8x8xf32>
    %610 = vector.extract_strided_slice %608 {offsets = [0, 1], sizes = [8, 8], strides = [1, 1]} : vector<8x14xf32> to vector<8x8xf32>
    %611 = arith.maximumf %609, %610 : vector<8x8xf32>
    %612 = vector.extract_strided_slice %608 {offsets = [0, 2], sizes = [8, 8], strides = [1, 1]} : vector<8x14xf32> to vector<8x8xf32>
    %613 = arith.maximumf %611, %612 : vector<8x8xf32>
    %614 = vector.extract_strided_slice %608 {offsets = [0, 3], sizes = [8, 8], strides = [1, 1]} : vector<8x14xf32> to vector<8x8xf32>
    %615 = arith.maximumf %613, %614 : vector<8x8xf32>
    %616 = vector.extract_strided_slice %608 {offsets = [0, 4], sizes = [8, 8], strides = [1, 1]} : vector<8x14xf32> to vector<8x8xf32>
    %617 = arith.maximumf %615, %616 : vector<8x8xf32>
    %618 = vector.extract_strided_slice %608 {offsets = [0, 5], sizes = [8, 8], strides = [1, 1]} : vector<8x14xf32> to vector<8x8xf32>
    %619 = arith.maximumf %617, %618 : vector<8x8xf32>
    %620 = vector.extract_strided_slice %608 {offsets = [0, 6], sizes = [8, 8], strides = [1, 1]} : vector<8x14xf32> to vector<8x8xf32>
    %621 = arith.maximumf %619, %620 : vector<8x8xf32>
    %c0_159 = arith.constant 0 : index
    %c6_160 = arith.constant 6 : index
    %c0_161 = arith.constant 0 : index
    %c0_162 = arith.constant 0 : index
    %622 = vector.load %arg4[%c0_159, %c6_160, %c0_161, %c0_162] : memref<1x8x8x8xf32, #tpu.memory_space<vmem>>, vector<1x1x8x8xf32>
    %623 = vector.shape_cast %622 : vector<1x1x8x8xf32> to vector<8x8xf32>
    %624 = vector.shape_cast %621 : vector<8x8xf32> to vector<1x1x8x8xf32>
    tpu.vector_store %arg4[%c0_159, %c6_160, %c0_161, %c0_162], %624 {strides = array<i32>} : memref<1x8x8x8xf32, #tpu.memory_space<vmem>>, vector<1x1x8x8xf32>,
    %c7_163 = arith.constant 7 : index
    %625 = memref.load %arg3[%c7_163] : memref<8xf32, #tpu.memory_space<smem>>
    %626 = vector.broadcast %625 : f32 to vector<8x8xf32>
    %627 = vector.extract_strided_slice %1 {offsets = [0, 0, 0], sizes = [1, 8, 8], strides = [1, 1, 1]} : vector<8x8x8xf32> to vector<1x8x8xf32>
    %628 = vector.shape_cast %627 : vector<1x8x8xf32> to vector<8x8xf32>
    %c0_164 = arith.constant 0 : index
    %c7_165 = arith.constant 7 : index
    %629 = memref.load %arg2[%c0_164, %c7_165] : memref<8x8xf32, #tpu.memory_space<smem>>
    %630 = vector.broadcast %629 : f32 to vector<8x8xf32>
    %631 = arith.mulf %628, %630 : vector<8x8xf32>
    %632 = arith.addf %626, %631 : vector<8x8xf32>
    %633 = vector.extract_strided_slice %1 {offsets = [1, 0, 0], sizes = [1, 8, 8], strides = [1, 1, 1]} : vector<8x8x8xf32> to vector<1x8x8xf32>
    %634 = vector.shape_cast %633 : vector<1x8x8xf32> to vector<8x8xf32>
    %c1_166 = arith.constant 1 : index
    %c7_167 = arith.constant 7 : index
    %635 = memref.load %arg2[%c1_166, %c7_167] : memref<8x8xf32, #tpu.memory_space<smem>>
    %636 = vector.broadcast %635 : f32 to vector<8x8xf32>
    %637 = arith.mulf %634, %636 : vector<8x8xf32>
    %638 = arith.addf %632, %637 : vector<8x8xf32>
    %639 = vector.extract_strided_slice %1 {offsets = [2, 0, 0], sizes = [1, 8, 8], strides = [1, 1, 1]} : vector<8x8x8xf32> to vector<1x8x8xf32>
    %640 = vector.shape_cast %639 : vector<1x8x8xf32> to vector<8x8xf32>
    %c2_168 = arith.constant 2 : index
    %c7_169 = arith.constant 7 : index
    %641 = memref.load %arg2[%c2_168, %c7_169] : memref<8x8xf32, #tpu.memory_space<smem>>
    %642 = vector.broadcast %641 : f32 to vector<8x8xf32>
    %643 = arith.mulf %640, %642 : vector<8x8xf32>
    %644 = arith.addf %638, %643 : vector<8x8xf32>
    %645 = vector.extract_strided_slice %1 {offsets = [3, 0, 0], sizes = [1, 8, 8], strides = [1, 1, 1]} : vector<8x8x8xf32> to vector<1x8x8xf32>
    %646 = vector.shape_cast %645 : vector<1x8x8xf32> to vector<8x8xf32>
    %c3_170 = arith.constant 3 : index
    %c7_171 = arith.constant 7 : index
    %647 = memref.load %arg2[%c3_170, %c7_171] : memref<8x8xf32, #tpu.memory_space<smem>>
    %648 = vector.broadcast %647 : f32 to vector<8x8xf32>
    %649 = arith.mulf %646, %648 : vector<8x8xf32>
    %650 = arith.addf %644, %649 : vector<8x8xf32>
    %651 = vector.extract_strided_slice %1 {offsets = [4, 0, 0], sizes = [1, 8, 8], strides = [1, 1, 1]} : vector<8x8x8xf32> to vector<1x8x8xf32>
    %652 = vector.shape_cast %651 : vector<1x8x8xf32> to vector<8x8xf32>
    %c4_172 = arith.constant 4 : index
    %c7_173 = arith.constant 7 : index
    %653 = memref.load %arg2[%c4_172, %c7_173] : memref<8x8xf32, #tpu.memory_space<smem>>
    %654 = vector.broadcast %653 : f32 to vector<8x8xf32>
    %655 = arith.mulf %652, %654 : vector<8x8xf32>
    %656 = arith.addf %650, %655 : vector<8x8xf32>
    %657 = vector.extract_strided_slice %1 {offsets = [5, 0, 0], sizes = [1, 8, 8], strides = [1, 1, 1]} : vector<8x8x8xf32> to vector<1x8x8xf32>
    %658 = vector.shape_cast %657 : vector<1x8x8xf32> to vector<8x8xf32>
    %c5_174 = arith.constant 5 : index
    %c7_175 = arith.constant 7 : index
    %659 = memref.load %arg2[%c5_174, %c7_175] : memref<8x8xf32, #tpu.memory_space<smem>>
    %660 = vector.broadcast %659 : f32 to vector<8x8xf32>
    %661 = arith.mulf %658, %660 : vector<8x8xf32>
    %662 = arith.addf %656, %661 : vector<8x8xf32>
    %663 = vector.extract_strided_slice %1 {offsets = [6, 0, 0], sizes = [1, 8, 8], strides = [1, 1, 1]} : vector<8x8x8xf32> to vector<1x8x8xf32>
    %664 = vector.shape_cast %663 : vector<1x8x8xf32> to vector<8x8xf32>
    %c6_176 = arith.constant 6 : index
    %c7_177 = arith.constant 7 : index
    %665 = memref.load %arg2[%c6_176, %c7_177] : memref<8x8xf32, #tpu.memory_space<smem>>
    %666 = vector.broadcast %665 : f32 to vector<8x8xf32>
    %667 = arith.mulf %664, %666 : vector<8x8xf32>
    %668 = arith.addf %662, %667 : vector<8x8xf32>
    %669 = vector.extract_strided_slice %1 {offsets = [7, 0, 0], sizes = [1, 8, 8], strides = [1, 1, 1]} : vector<8x8x8xf32> to vector<1x8x8xf32>
    %670 = vector.shape_cast %669 : vector<1x8x8xf32> to vector<8x8xf32>
    %c7_178 = arith.constant 7 : index
    %c7_179 = arith.constant 7 : index
    %671 = memref.load %arg2[%c7_178, %c7_179] : memref<8x8xf32, #tpu.memory_space<smem>>
    %672 = vector.broadcast %671 : f32 to vector<8x8xf32>
    %673 = arith.mulf %670, %672 : vector<8x8xf32>
    %674 = arith.addf %668, %673 : vector<8x8xf32>
    %cst_180 = arith.constant 0.000000e+00 : f32
    %675 = vector.broadcast %cst_180 : f32 to vector<8x8xf32>
    %676 = arith.maximumf %674, %675 : vector<8x8xf32>
    %cst_181 = arith.constant 0xFF800000 : f32
    %677 = vector.broadcast %cst_181 : f32 to vector<3x8xf32>
    %678 = tpu.concatenate %677, %676 in 0 : vector<3x8xf32>, vector<8x8xf32> -> vector<11x8xf32>
    %679 = vector.broadcast %cst_181 : f32 to vector<3x8xf32>
    %680 = tpu.concatenate %678, %679 in 0 : vector<11x8xf32>, vector<3x8xf32> -> vector<14x8xf32>
    %681 = vector.extract_strided_slice %680 {offsets = [0, 0], sizes = [8, 8], strides = [1, 1]} : vector<14x8xf32> to vector<8x8xf32>
    %682 = vector.extract_strided_slice %680 {offsets = [1, 0], sizes = [8, 8], strides = [1, 1]} : vector<14x8xf32> to vector<8x8xf32>
    %683 = arith.maximumf %681, %682 : vector<8x8xf32>
    %684 = vector.extract_strided_slice %680 {offsets = [2, 0], sizes = [8, 8], strides = [1, 1]} : vector<14x8xf32> to vector<8x8xf32>
    %685 = arith.maximumf %683, %684 : vector<8x8xf32>
    %686 = vector.extract_strided_slice %680 {offsets = [3, 0], sizes = [8, 8], strides = [1, 1]} : vector<14x8xf32> to vector<8x8xf32>
    %687 = arith.maximumf %685, %686 : vector<8x8xf32>
    %688 = vector.extract_strided_slice %680 {offsets = [4, 0], sizes = [8, 8], strides = [1, 1]} : vector<14x8xf32> to vector<8x8xf32>
    %689 = arith.maximumf %687, %688 : vector<8x8xf32>
    %690 = vector.extract_strided_slice %680 {offsets = [5, 0], sizes = [8, 8], strides = [1, 1]} : vector<14x8xf32> to vector<8x8xf32>
    %691 = arith.maximumf %689, %690 : vector<8x8xf32>
    %692 = vector.extract_strided_slice %680 {offsets = [6, 0], sizes = [8, 8], strides = [1, 1]} : vector<14x8xf32> to vector<8x8xf32>
    %693 = arith.maximumf %691, %692 : vector<8x8xf32>
    %cst_182 = arith.constant 0xFF800000 : f32
    %694 = vector.broadcast %cst_182 : f32 to vector<8x3xf32>
    %695 = tpu.concatenate %694, %693 in 1 : vector<8x3xf32>, vector<8x8xf32> -> vector<8x11xf32>
    %696 = vector.broadcast %cst_182 : f32 to vector<8x3xf32>
    %697 = tpu.concatenate %695, %696 in 1 : vector<8x11xf32>, vector<8x3xf32> -> vector<8x14xf32>
    %698 = vector.extract_strided_slice %697 {offsets = [0, 0], sizes = [8, 8], strides = [1, 1]} : vector<8x14xf32> to vector<8x8xf32>
    %699 = vector.extract_strided_slice %697 {offsets = [0, 1], sizes = [8, 8], strides = [1, 1]} : vector<8x14xf32> to vector<8x8xf32>
    %700 = arith.maximumf %698, %699 : vector<8x8xf32>
    %701 = vector.extract_strided_slice %697 {offsets = [0, 2], sizes = [8, 8], strides = [1, 1]} : vector<8x14xf32> to vector<8x8xf32>
    %702 = arith.maximumf %700, %701 : vector<8x8xf32>
    %703 = vector.extract_strided_slice %697 {offsets = [0, 3], sizes = [8, 8], strides = [1, 1]} : vector<8x14xf32> to vector<8x8xf32>
    %704 = arith.maximumf %702, %703 : vector<8x8xf32>
    %705 = vector.extract_strided_slice %697 {offsets = [0, 4], sizes = [8, 8], strides = [1, 1]} : vector<8x14xf32> to vector<8x8xf32>
    %706 = arith.maximumf %704, %705 : vector<8x8xf32>
    %707 = vector.extract_strided_slice %697 {offsets = [0, 5], sizes = [8, 8], strides = [1, 1]} : vector<8x14xf32> to vector<8x8xf32>
    %708 = arith.maximumf %706, %707 : vector<8x8xf32>
    %709 = vector.extract_strided_slice %697 {offsets = [0, 6], sizes = [8, 8], strides = [1, 1]} : vector<8x14xf32> to vector<8x8xf32>
    %710 = arith.maximumf %708, %709 : vector<8x8xf32>
    %c0_183 = arith.constant 0 : index
    %c7_184 = arith.constant 7 : index
    %c0_185 = arith.constant 0 : index
    %c0_186 = arith.constant 0 : index
    %711 = vector.load %arg4[%c0_183, %c7_184, %c0_185, %c0_186] : memref<1x8x8x8xf32, #tpu.memory_space<vmem>>, vector<1x1x8x8xf32>
    %712 = vector.shape_cast %711 : vector<1x1x8x8xf32> to vector<8x8xf32>
    %713 = vector.shape_cast %710 : vector<8x8xf32> to vector<1x1x8x8xf32>
    tpu.vector_store %arg4[%c0_183, %c7_184, %c0_185, %c0_186], %713 {strides = array<i32>} : memref<1x8x8x8xf32, #tpu.memory_space<vmem>>, vector<1x1x8x8xf32>,
    return
  }
  func.func @transform_0(%arg0: i32) -> (i32, i32, i32, i32) {
    %c0_i32 = arith.constant 0 : i32
    %c0_i32_0 = arith.constant 0 : i32
    %c0_i32_1 = arith.constant 0 : i32
    %c0_i32_2 = arith.constant 0 : i32
    return %arg0, %c0_i32, %c0_i32_0, %c0_i32_1 : i32, i32, i32, i32
  }
  func.func @transform_1(%arg0: i32) -> (i32, i32) {
    %c0_i32 = arith.constant 0 : i32
    %c0_i32_0 = arith.constant 0 : i32
    %c0_i32_1 = arith.constant 0 : i32
    return %c0_i32, %c0_i32_0 : i32, i32
  }
  func.func @transform_2(%arg0: i32) -> i32 {
    %c0_i32 = arith.constant 0 : i32
    %c0_i32_0 = arith.constant 0 : i32
    return %c0_i32 : i32
  }
  func.func @transform_3(%arg0: i32) -> (i32, i32, i32, i32) {
    %c0_i32 = arith.constant 0 : i32
    %c0_i32_0 = arith.constant 0 : i32
    %c0_i32_1 = arith.constant 0 : i32
    %c0_i32_2 = arith.constant 0 : i32
    return %arg0, %c0_i32, %c0_i32_0, %c0_i32_1 : i32, i32, i32, i32
  }
}

</mosaic_0001>

<bundles_post_ra>
// kernel: tpu_custom_call.1
= control target key start
LH: loop header
LB: loop body
LE: loop exit
PB: predicated region body
PF: predicated region fallthrough
CT: control target
= control target key end

     0   :  { %8 = vsyncpa [#allocation3], 0  ;;  %s2266_s0 = inlined_call_operand.hbm [shape: f32[2,8,8,8], index: 0, kind: input, shape index: {}]   ;;  %s2267_s1 = inlined_call_operand.hbm [shape: f32[8,8], index: 1, kind: input, shape index: {}]   ;;  %s2268_s2 = inlined_call_operand.vmem [shape: f32[8], index: 2, kind: input, shape index: {}]   ;;  %s2269_s3 = inlined_call_operand.hbm [shape: f32[2,8,8,8], index: 3, kind: output, shape index: {}]  }
   0x1   :  { %10 = vsyncpa [#allocation3 + $0x1], 0 }
   0x2   :  { %11 = vsyncpa [#allocation5], 0 }
   0x3   :  { %12 = vsyncpa [#allocation6], 0 }
   0x4   :  { %13 = vsyncpa [#allocation4], 0 }
   0x5   :  { %15 = vsyncpa [#allocation4 + $0x1], 0  ;;  %s1525_s12 = smov 0   ;;  %s1527_s13 = smov 0  }
   0x6   :  { %s1529_s14 = smov 0   ;;  %s1531_s15 = smov 0  }
   0x7 LB: > { %s1546_s16 = sadd.s32 4294967295, %s1488_s15   ;;  %s1181_s17 = sadd.s32 4294967294, %s1488_s15   ;;  %s1488_s15 = sphi %s1531_s15, %s2294_s15   ;;  %s1484_s14 = sphi %s1529_s14, %s2293_s14   ;;  %s1480_s13 = sphi %s1527_s13, %s2292_s13   ;;  %s1476_s12 = sphi %s1525_s12, %s2291_s12  }
   0x8   : > { %s1550_s18 = sadd.s32 1, %s1488_s15   ;;  %s28_s19 = sadd.s32 1, %s1484_s14 }
   0x9   : > { %s25_s20 = ssub.s32 %s1488_s15, %s1550_s18  ;;  %p35_p0 = scmp.ne.s32.totalorder %s1484_s14, %s1480_s13 }
   0xa   : > { %p26_p1 = scmp.eq.s32.totalorder %s25_s20, 0  ;;  %p36_p2 = scmp.eq.s32.totalorder %s1488_s15, 0 }
   0xb   : > { %p41_p3 = scmp.ne.s32.totalorder %s1480_s13, %s1476_s12  ;;  %p2270_p4 = scmp.eq.s32.totalorder %s1546_s16, 0 }
   0xc   : > { %s1562_s21 = scalar_select %p26_p1, %s1484_s14, %s28_s19  }
   0xd   : > { %p1564_p5 = por %p36_p2, %p35_p0  ;;  %p1570_p6 = por %p2270_p4, %p41_p3 }
   0xe   : > { %p107_p7 = scmp.eq.s32.totalorder %s1546_s16, 1  ;;  %p113_p8 = scmp.eq.s32.totalorder %s1181_s17, 1 }
   0xf   : > { %s2275_s23 = scalar_select %p1570_p6, 1, 0 }
  0x10   : > { %p1182_p9 = scmp.ge.s32.totalorder %s1488_s15, 1  ;;  %p120_p10 = scmp.lt.s32.totalorder %s1488_s15, 3 }
  0x11   : > { %p1577_p11 = por %p107_p7, %p35_p0  ;;  %p1581_p12 = por %p113_p8, %p41_p3 }
  0x12   : > { %p1585_p13 = pnand %p1182_p9, %p120_p10  ;;  %p1307_p4 = scmp.lt.s32.totalorder %s1488_s15, 2 }
  0x13   : > { %s2276_s24 = scalar_select %p1577_p11, 1, 0 }
  0x14   : > { %s2277_s25 = scalar_select %p1581_p12, 1, 0 }
  0x15   : > { %p1290_p2 = pneg %p1585_p13  ;;  %s142_s29 = sshll.u32 %s2268_s2, 4  ;;  %s143_s29 = int_to_ptr.vmem [resolvable:$true] %s142_s29 }
  0x16   : > { %p2279_p0 = scmp.eq.s32.totalorder %s1546_s16, 0  ;;  %p1604_p3 = pnand %p1307_p4, %p1564_p5 }
  0x17   : > { %s153_s5 = sand.u32 1, %s1484_s14   ;;  %s1356_s8 = scalar_lea.hbm %s2267_s1, 128 }
  0x18   : > { %p1598_p7 = pnand %p1290_p2, %p2279_p0  ;;  %p1357_p8 = scmp.ne.s32.totalorder %s2267_s1, %s1356_s8 }
  0x19   : > { %p1363_p4 = scmp.lt.u32.totalorder %s1356_s8, %s2267_s1 }
  0x1a   : > { %p1358_p9 = pneg %p1598_p7 }
  0x1c   : > { %p1359_p10 = pnand %p1358_p9, %p1357_p8 }
  0x1e   : > { %p1360_p2 = pneg %p1359_p10 }
  0x20   : > { %p1365_p5 = pnand %p1363_p4, %p1360_p2 }
  0x22   : > { %1368 = shalt.err (!%p1365_p5)
}
  0x23   : > { %s1490_s19 = smov [#allocation7]   ;;  %s1369_s27 = scalar_lea.vmem %s143_s29, 16 }
  0x24   : > { %1293 = dma.hbm_to_smem (!%p1598_p7), %s2267_s1, 128, %s1490_s19, [#allocation5]  }
  0x25   : > { %p1370_p0 = scmp.ne.s32.totalorder %s143_s29, %s1369_s27  ;;  %p1377_p11 = scmp.lt.s32.totalorder %s143_s29, %s143_s29 }
  0x26   : > { %p1378_p8 = scmp.lt.s32.totalorder %s1369_s27, %s1369_s27 }
  0x27   : > { %p1372_p1 = pnand %p1370_p0, %p1358_p9 }
  0x28   : > { %p1379_p10 = por %p1378_p8, %p1377_p11 }
  0x29   : > { %p1373_p12 = pneg %p1372_p1 }
  0x2b   : > { %p1380_p6 = pnand %p1379_p10, %p1373_p12 }
  0x2d   : > { %1383 = shalt.err (!%p1380_p6)
}
  0x2e   : > { %s1491_s28 = smov [#allocation8]   ;;  %s1186_s6 = sshll.u32 %s153_s5, 6 }
  0x2f   : > { %1296 = dma.vmem_to_smem (!%p1598_p7), %s143_s29, 16, %s1491_s28, [#allocation6]  }
  0x30   : > { %s1276_s7 = sshll.u32 %s1488_s15, 10  ;;  %s157_s11 = scalar_lea.vmem [#allocation2], %s1186_s6 }
  0x31   : > { %s1631_s10 = scalar_lea.hbm %s2266_s0, %s1276_s7  ;;  %s164_s17 = sshll.u32 %s157_s11, 4  ;;  %s1633_s17 = int_to_ptr.vmem [resolvable:$true] %s164_s17 }
  0x32   : > { %s1635_s30 = scalar_lea.sflag [#allocation3], %s153_s5  ;;  %s1384_s19 = scalar_lea.hbm %s1631_s10, 1024 }
  0x33   : > { %p1385_p6 = scmp.ne.s32.totalorder %s1631_s10, %s1384_s19  ;;  %p1386_p11 = pneg %p1604_p3 }
  0x34   : > { %s1389_s22 = scalar_lea.hbm %s2266_s0, 2048  ;;  %p1390_p7 = scmp.lt.u32.totalorder %s1631_s10, %s2266_s0 }
  0x35   : > { %p1387_p12 = pnand %p1386_p11, %p1385_p6  ;;  %p1391_p9 = scmp.lt.u32.totalorder %s1389_s22, %s1384_s19 }
  0x36   : > { %p1393_p4 = scmp.lt.u32.totalorder %s1384_s19, %s1631_s10 }
  0x37   : > { %p1388_p1 = pneg %p1387_p12  ;;  %p1392_p2 = por %p1391_p9, %p1390_p7 }
  0x39   : > { %p1394_p5 = por %p1393_p4, %p1392_p2 }
  0x3b   : > { %p1395_p0 = pnand %p1394_p5, %p1388_p1 }
  0x3d   : > { %1398 = shalt.err (!%p1395_p0)
}
  0x3e   : > { %s1399_s5 = scalar_lea.vmem %s1633_s17, 1024  ;;  %s1492_s6 = smov [#allocation2]  }
  0x3f   : > { %p1400_p8 = scmp.ne.s32.totalorder %s1633_s17, %s1399_s5  ;;  %s1404_s7 = sshll.u32 %s1492_s6, 4  ;;  %s1405_s7 = int_to_ptr.vmem [resolvable:$false] %s1404_s7 }
  0x40   : > { %s1406_s8 = scalar_lea.vmem %s1405_s7, 2048  ;;  %p1407_p12 = scmp.lt.s32.totalorder %s1633_s17, %s1405_s7 }
  0x41   : > { %p1402_p10 = pnand %p1400_p8, %p1386_p11  ;;  %p1408_p7 = scmp.lt.s32.totalorder %s1406_s8, %s1399_s5 }
  0x43   : > { %p1403_p6 = pneg %p1402_p10  ;;  %p1409_p9 = por %p1408_p7, %p1407_p12 }
  0x45   : > { %p1410_p2 = pnand %p1409_p9, %p1403_p6 }
  0x47   : > { %1413 = shalt.err (!%p1410_p2)
}
  0x48   : > { %s1493_s9 = smov 128   ;;  %s1494_s11 = smov 8  }
  0x49   : > { %1300 = dma.hbm_to_vmem [thread:$0]  (!%p1604_p3), %s1631_s10, 1024, %s1633_s17, %s1635_s30, %s1493_s9, %s1493_s9, %s1494_s11  }
  0x4a   : > { %176 = sbr.rel (%p1585_p13) target bundleno = 528 (0x210), region = 32  ;;  %s1666_s19 = sand.u32 (!%p1585_p13), 1, %s1480_s13  }
  0x4b   : > { %s2273_s29 = sshll.u32 (!%p1585_p13), %s1666_s19, 6  ;;  %s179_s20 = scalar_lea.sflag (!%p1585_p13), [#allocation3], %s1666_s19 }
  0x4c   : > { %s1672_s22 = scalar_lea.vmem (!%p1585_p13), [#allocation2], %s2273_s29  ;;  %p2282_p11 = scmp.ne.s32.totalorder (!%p1585_p13), %s2275_s23, 0 }
  0x51   : > { %1459 = dma.done.wait (%p2282_p11), %s179_s20, 1024  }
  0x52   : > { %1461 = vsyncadd (%p2282_p11), %s179_s20, 4294966272  ;;  %p2283_p3 = scmp.eq.s32.totalorder %s1546_s16, 0 }
  0x54   : > { %1463 = dma.done.wait (%p2283_p3), [#allocation5], 128   ;;  %p2284_p13 = pmov %p2283_p3 }
  0x55   : > { %p2285_p1 = pmov %p2283_p3 }
  0x56   : > { %1465 = vsyncadd (%p2284_p13), [#allocation5], 4294967168 }
  0x57   : > { %1467 = dma.done.wait (%p2285_p1), [#allocation6], 16   ;;  %p2286_p4 = pmov %p2285_p1 }
  0x59   : > { %1469 = vsyncadd (%p2286_p4), [#allocation6], 4294967280 }
  0x5a   : > { %195 = sfence }
  0x5b   : > { %s1686_s26 = sld [smem:[#allocation8]]  ;;  %v1697_v0 = vld [vmem:[%s1672_s22] sm:$0xff]  ;;  %v1702_v1 = vld [vmem:[%s1672_s22 + $0x8] sm:$0xff]  ;;  %s1704_s6 = sld [smem:[#allocation8 + $0x1]]  ;;  %v1709_v2 = vld [vmem:[%s1672_s22 + $0x10] sm:$0xff]  ;;  %vm260_vm0 = vcmask 1042432  }
  0x5c   : > { %s224_s23 = sld [smem:[#allocation7]]  ;;  %s1706_s7 = sld [smem:[#allocation7 + $0x1]]  ;;  %v1717_v5 = vld [vmem:[%s1672_s22 + $0x18] sm:$0xff]  ;;  %v1725_v9 = vld [vmem:[%s1672_s22 + $0x20] sm:$0xff]  ;;  %v1728_v10 = vld [vmem:[%s1672_s22 + $0x28] sm:$0xff]  ;;  %vm265_vm1 = vcmask 1046528  }
  0x5d   : > { %s1194_s4 = sld [smem:[#allocation7 + $0x80]]  ;;  %s1712_s8 = sld [smem:[#allocation7 + $0x81]]  ;;  %v1744_v17 = vld [vmem:[%s1672_s22 + $0x30] sm:$0xff]  ;;  %v1753_v20 = vld [vmem:[%s1672_s22 + $0x38] sm:$0xff]  ;;  %vm271_vm2 = vcmask 1045504   ;;  %vm277_vm3 = vcmask 1044480  }
  0x5e   : > { %s1195_s10 = sld [smem:[#allocation7 + $0x100]]  ;;  %s1714_s9 = sld [smem:[#allocation7 + $0x101]]  ;;  %vm283_vm4 = vcmask 1043456   ;;  %vm294_vm5 = vcmask 1041408   ;;  %vm304_vm6 = vcmask 23552   ;;  %vm306_vm7 = vcmask 89088  }
  0x5f   : > { %s1688_s17 = sld [smem:[#allocation7 + $0x180]]  ;;  %s1720_s11 = sld [smem:[#allocation7 + $0x181]]  ;;  %vm333_vm8 = vcmask 64512  }
  0x60   : > { %s1690_s30 = sld [smem:[#allocation7 + $0x200]]  ;;  %s1722_s20 = sld [smem:[#allocation7 + $0x201]] }
  0x61   : > { %s1692_s27 = sld [smem:[#allocation7 + $0x280]]  ;;  %v223_v3 = vstv %s1686_s26  ;;  %s1733_s26 = sld [smem:[#allocation7 + $0x281]]  ;;  %v336_v25 = vstv %s1704_s6 }
  0x62   : > { %s1694_s28 = sld [smem:[#allocation7 + $0x300]]  ;;  %v225_v4 = vstv %s224_s23  ;;  %s1735_s23 = sld [smem:[#allocation7 + $0x301]]  ;;  %v338_v26 = vstv %s1706_s7 }
  0x63   : > { %s1699_s5 = sld [smem:[#allocation7 + $0x380]]  ;;  %v226_v6 = vmul.f32 %v225_v4, %v1697_v0  ;;  %v229_v7 = vstv %s1194_s4  ;;  %s1739_s4 = sld [smem:[#allocation7 + $0x381]]  ;;  %v342_v27 = vstv %s1712_s8  ;;  %v339_v31 = vmul.f32 %v338_v26, %v1697_v0 }
  0x64   : > { %v233_v8 = vstv %s1195_s10  ;;  %v230_v11 = vmul.f32 %v229_v7, %v1702_v1  ;;  %s1741_s10 = sld [smem:[#allocation8 + $0x2]]  ;;  %v346_v28 = vstv %s1714_s9  ;;  %v343_v32 = vmul.f32 %v342_v27, %v1702_v1  ;;  %s1783_s7 = sld [smem:[#allocation8 + $0x3]] }
  0x65   : > { %v237_v12 = vstv %s1688_s17  ;;  %v227_v14 = vadd.f32 %v226_v6, %v223_v3  ;;  %v234_v15 = vmul.f32 %v233_v8, %v1709_v2  ;;  %s1748_s17 = sld [smem:[#allocation7 + $0x2]]  ;;  %v350_v34 = vstv %s1720_s11  ;;  %s1785_s8 = sld [smem:[#allocation7 + $0x3]] }
  0x66   : > { %v241_v13 = vstv %s1690_s30  ;;  %v238_v18 = vmul.f32 %v237_v12, %v1717_v5  ;;  %s1750_s30 = sld [smem:[#allocation7 + $0x82]]  ;;  %v354_v35 = vstv %s1722_s20  ;;  %v340_v38 = vadd.f32 %v339_v31, %v336_v25  ;;  %s1791_s9 = sld [smem:[#allocation7 + $0x83]] }
  0x67   : > { %v245_v16 = vstv %s1692_s27  ;;  %v231_v21 = vadd.f32 %v230_v11, %v227_v14  ;;  %v242_v22 = vmul.f32 %v241_v13, %v1725_v9  ;;  %s1758_s27 = sld [smem:[#allocation7 + $0x102]]  ;;  %v358_v36 = vstv %s1733_s26  ;;  %s1793_s11 = sld [smem:[#allocation7 + $0x103]] }
  0x68   : > { %v249_v19 = vstv %s1694_s28  ;;  %v246_v23 = vmul.f32 %v245_v16, %v1728_v10  ;;  %s1760_s29 = sld [smem:[#allocation7 + $0x182]]  ;;  %v347_v39 = vmul.f32 %v346_v28, %v1709_v2  ;;  %v362_v40 = vstv %s1735_s23  ;;  %s1801_s20 = sld [smem:[#allocation7 + $0x183]] }
  0x69   : > { %v253_v24 = vstv %s1699_s5  ;;  %s1766_s22 = sld [smem:[#allocation7 + $0x202]]  ;;  %v235_v29 = vadd.f32 %v234_v15, %v231_v21  ;;  %v250_v30 = vmul.f32 %v249_v19, %v1744_v17  ;;  %v351_v41 = vmul.f32 %v350_v34, %v1717_v5  ;;  %s1803_s26 = sld [smem:[#allocation7 + $0x203]] }
  0x6a   : > { %s1768_s28 = sld [smem:[#allocation7 + $0x282]]  ;;  %v254_v33 = vmul.f32 %v253_v24, %v1753_v20  ;;  %v355_v42 = vmul.f32 %v354_v35, %v1725_v9  ;;  %v359_v43 = vmul.f32 %v358_v36, %v1728_v10  ;;  %v366_v44 = vstv %s1739_s4  ;;  %s1824_s23 = sld [smem:[#allocation7 + $0x303]] }
  0x6b   : > { %s1777_s5 = sld [smem:[#allocation7 + $0x302]]  ;;  %v239_v37 = vadd.f32 %v238_v18, %v235_v29  ;;  %v344_v46 = vadd.f32 %v343_v32, %v340_v38  ;;  %v441_v47 = vstv %s1741_s10  ;;  %v443_v48 = vstv %s1748_s17  ;;  %s1835_s4 = sld [smem:[#allocation7 + $0x383]] }
  0x6c   : > { %s1779_s6 = sld [smem:[#allocation7 + $0x382]]  ;;  %v444_v49 = vmul.f32 %v443_v48, %v1697_v0  ;;  %v447_v50 = vstv %s1750_s30  ;;  %v363_v55 = vmul.f32 %v362_v40, %v1744_v17  ;;  %v367_v63 = vmul.f32 %v366_v44, %v1753_v20  ;;  %s1841_s10 = sld [smem:[#allocation7 + $0x5]] }
  0x6d   : > { %v243_v45 = vadd.f32 %v242_v22, %v239_v37  ;;  %v451_v51 = vstv %s1758_s27  ;;  %v348_v54 = vadd.f32 %v347_v39, %v344_v46  ;;  %v448_v56 = vmul.f32 %v447_v50, %v1702_v1  ;;  %s1850_s17 = sld [smem:[#allocation8 + $0x5]]  ;;  %p2288_p0 = scmp.ne.s32.totalorder %s2276_s24, 0 }
  0x6e   : > { %v455_v52 = vstv %s1760_s29  ;;  %v445_v57 = vadd.f32 %v444_v49, %v441_v47  ;;  %v452_v58 = vmul.f32 %v451_v51, %v1709_v2  ;;  %v546_v14 = vstv %s1783_s7  ;;  %s1822_s29 = sld [smem:[#allocation7 + $0x283]]  ;;  %s1854_s30 = sld [smem:[#allocation7 + $0x85]] }
  0x6f   : > { %v247_v53 = vadd.f32 %v246_v23, %v243_v45  ;;  %v459_v59 = vstv %s1766_s22  ;;  %v352_v62 = vadd.f32 %v351_v41, %v348_v54  ;;  %v456_v3 = vmul.f32 %v455_v52, %v1717_v5  ;;  %s1856_s27 = sld [smem:[#allocation7 + $0x105]] }
  0x70   : > { %v463_v60 = vstv %s1768_s28  ;;  %v449_v4 = vadd.f32 %v448_v56, %v445_v57  ;;  %v460_v6 = vmul.f32 %v459_v59, %v1725_v9  ;;  %v548_v16 = vstv %s1785_s8  ;;  %s1869_s22 = sld [smem:[#allocation7 + $0x185]]  ;;  %s1495_s28 = smov 3  }
  0x71   : > { %v251_v61 = vadd.f32 %v250_v30, %v247_v53  ;;  %v464_v7 = vmul.f32 %v463_v60, %v1728_v10  ;;  %v467_v8 = vstv %s1777_s5  ;;  %v356_v12 = vadd.f32 %v355_v42, %v352_v62  ;;  %s1877_s5 = sld [smem:[#allocation7 + $0x205]] }
  0x72   : > { %v471_v13 = vstv %s1779_s6  ;;  %v453_v15 = vadd.f32 %v452_v58, %v449_v4  ;;  %v552_v18 = vstv %s1791_s9  ;;  %v556_v19 = vstv %s1793_s11  ;;  %s1882_s6 = sld [smem:[#allocation7 + $0x285]]  ;;  %s1890_s9 = sld [smem:[#allocation8 + $0x4]] }
  0x73   : > { %v255_v11 = vadd.f32 %v254_v33, %v251_v61  ;;  %v360_v22 = vadd.f32 %v359_v43, %v356_v12  ;;  %v549_v23 = vmul.f32 %v548_v16, %v1697_v0  ;;  %v553_v24 = vmul.f32 %v552_v18, %v1702_v1  ;;  %s1886_s7 = sld [smem:[#allocation7 + $0x305]]  ;;  %s1892_s11 = sld [smem:[#allocation7 + $0x4]] }
  0x74   : > { %v457_v25 = vadd.f32 %v456_v3, %v453_v15  ;;  %v468_v26 = vmul.f32 %v467_v8, %v1744_v17  ;;  %v560_v27 = vstv %s1801_s20  ;;  %v564_v28 = vstv %s1803_s26  ;;  %s1888_s8 = sld [smem:[#allocation7 + $0x385]]  ;;  %s1899_s20 = sld [smem:[#allocation7 + $0x84]] }
  0x75   : > { %v256_v21 = vmax.f32 %v255_v11, 0.0  ;;  %v364_v30 = vadd.f32 %v363_v55, %v360_v22  ;;  %v472_v31 = vmul.f32 %v471_v13, %v1753_v20  ;;  %v550_v32 = vadd.f32 %v549_v23, %v546_v14  ;;  %s1915_s26 = sld [smem:[#allocation7 + $0x104]] }
  0x76   : > { %v461_v33 = vadd.f32 %v460_v6, %v457_v25  ;;  %v557_v34 = vmul.f32 %v556_v19, %v1709_v2  ;;  %v561_v35 = vmul.f32 %v560_v27, %v1717_v5  ;;  %v1833_v36 = vmul.f32 %v564_v28, %v1725_v9 }
  0x77   : > { %v258_v29 = vrot.slane %v256_v21, 5  ;;  %v368_v39 = vadd.f32 %v367_v63, %v364_v30  ;;  %v554_v40 = vadd.f32 %v553_v24, %v550_v32  ;;  %v568_v55 = vstv %s1822_s29  ;;  %s1917_s29 = sld [smem:[#allocation7 + $0x184]] }
  0x78   : > { %v572_v56 = vstv %s1824_s23  ;;  %v465_v60 = vadd.f32 %v464_v7, %v461_v33  ;;  %v569_v8 = vmul.f32 %v568_v55, %v1728_v10  ;;  %v576_v11 = vstv %s1835_s4  ;;  %s1922_s23 = sld [smem:[#allocation7 + $0x204]] }
  0x79   : > { %v261_v37 = vsel %vm260_vm0, -inf, %v258_v29  ;;  %v262_v38 = vsel %vm260_vm0, %v258_v29, -inf  ;;  %v369_v59 = vmax.f32 %v368_v39, 0.0  ;;  %v558_v3 = vadd.f32 %v557_v34, %v554_v40  ;;  %s1924_s4 = sld [smem:[#allocation7 + $0x284]] }
  0x7a   : > { %v266_v41 = vrot.slane %v261_v37, 1  ;;  %v267_v42 = vrot.slane %v262_v38, 1  ;;  %v272_v43 = vrot.slane %v261_v37, 2  ;;  %v273_v44 = vrot.slane %v262_v38, 2 }
  0x7b   : > { %v278_v45 = vrot.slane %v261_v37, 3  ;;  %v279_v46 = vrot.slane %v262_v38, 3  ;;  %v284_v47 = vrot.slane %v261_v37, 4  ;;  %v285_v48 = vrot.slane %v262_v38, 4 }
  0x7c   : > { %v268_v49 = vsel %vm265_vm1, %v266_v41, %v267_v42  ;;  %v274_v50 = vsel %vm271_vm2, %v272_v43, %v273_v44  ;;  %v289_v51 = vrot.slane %v261_v37, 5  ;;  %v290_v52 = vrot.slane %v262_v38, 5 }
  0x7d   : > { %v270_v53 = vmax.f32 %v261_v37, %v268_v49  ;;  %v295_v54 = vrot.slane %v261_v37, 6  ;;  %v280_v57 = vsel %vm277_vm3, %v278_v45, %v279_v46  ;;  %v296_v58 = vrot.slane %v262_v38, 6 }
  0x7e   : > { %v286_v62 = vsel %vm283_vm4, %v284_v47, %v285_v48  ;;  %v291_v63 = vsel %vm260_vm0, %v289_v51, %v290_v52  ;;  %v371_v4 = vrot.slane %v369_v59, 5  ;;  %v469_v6 = vadd.f32 %v468_v26, %v465_v60 }
  0x7f   : > { %v276_v61 = vmax.f32 %v270_v53, %v274_v50  ;;  %v297_v13 = vsel %vm294_vm5, %v295_v54, %v296_v58  ;;  %v562_v14 = vadd.f32 %v561_v35, %v558_v3  ;;  %v573_v7 = vmul.f32 %v572_v56, %v1744_v17 }
  0x80   : > { %v373_v15 = vsel %vm260_vm0, -inf, %v371_v4  ;;  %v374_v16 = vsel %vm260_vm0, %v371_v4, -inf  ;;  %v473_v18 = vadd.f32 %v472_v31, %v469_v6  ;;  %v1861_v19 = vmul.f32 %v576_v11, %v1753_v20 }
  0x81   : > { %v282_v12 = vmax.f32 %v276_v61, %v280_v57  ;;  %v377_v22 = vrot.slane %v373_v15, 1  ;;  %v378_v23 = vrot.slane %v374_v16, 1  ;;  %v382_v24 = vrot.slane %v373_v15, 2 }
  0x82   : > { %v383_v25 = vrot.slane %v374_v16, 2  ;;  %v387_v26 = vrot.slane %v373_v15, 3  ;;  %v388_v27 = vrot.slane %v374_v16, 3  ;;  %v758_v28 = vstv %s1841_s10  ;;  %s1928_s10 = sld [smem:[#allocation7 + $0x304]] }
  0x83   : > { %v288_v21 = vmax.f32 %v282_v12, %v286_v62  ;;  %v379_v30 = vsel %vm265_vm1, %v377_v22, %v378_v23  ;;  %v392_v32 = vrot.slane %v373_v15, 4  ;;  %v393_v33 = vrot.slane %v374_v16, 4 }
  0x84   : > { %v381_v34 = vmax.f32 %v373_v15, %v379_v30  ;;  %v384_v31 = vsel %vm271_vm2, %v382_v24, %v383_v25  ;;  %v397_v35 = vrot.slane %v373_v15, 5  ;;  %v398_v37 = vrot.slane %v374_v16, 5 }
  0x85   : > { %v293_v29 = vmax.f32 %v288_v21, %v291_v63  ;;  %v389_v39 = vsel %vm277_vm3, %v387_v26, %v388_v27  ;;  %v402_v40 = vrot.slane %v373_v15, 6  ;;  %v403_v41 = vrot.slane %v374_v16, 6 }
  0x86   : > { %v386_v42 = vmax.f32 %v381_v34, %v384_v31  ;;  %v474_v43 = vmax.f32 %v473_v18, 0.0  ;;  %v566_v44 = vadd.f32 %v1833_v36, %v562_v14  ;;  %v756_v45 = vstv %s1850_s17  ;;  %s1930_s17 = sld [smem:[#allocation7 + $0x384]] }
  0x87   : > { %v299_v38 = vmax.f32 %v293_v29, %v297_v13  ;;  %v394_v46 = vsel %vm283_vm4, %v392_v32, %v393_v33  ;;  %v759_v47 = vmul.f32 %v758_v28, %v1697_v0  ;;  %v762_v48 = vstv %s1854_s30  ;;  %s1934_s30 = sld [smem:[#allocation8 + $0x7]] }
  0x88   : > { %v766_v49 = vstv %s1856_s27  ;;  %v391_v50 = vmax.f32 %v386_v42, %v389_v39  ;;  %v399_v51 = vsel %vm260_vm0, %v397_v35, %v398_v37  ;;  %v476_v52 = vrot.slane %v474_v43, 5  ;;  %s1936_s27 = sld [smem:[#allocation7 + $0x7]] }
  0x89   : > { %301 = vrot.lane.b32.xlu0 %v299_v38, %s1495_s28  ;;  %v570_v53 = vadd.f32 %v569_v8, %v566_v44  ;;  %v404_v36 = vsel %vm294_vm5, %v402_v40, %v403_v41  ;;  %v760_v54 = vadd.f32 %v759_v47, %v756_v45  ;;  %v763_v55 = vmul.f32 %v762_v48, %v1702_v1 }
  0x8a   : > { %v767_v56 = vmul.f32 %v766_v49, %v1709_v2  ;;  %v396_v57 = vmax.f32 %v391_v50, %v394_v46  ;;  %v478_v58 = vsel %vm260_vm0, -inf, %v476_v52  ;;  %v479_v59 = vsel %vm260_vm0, %v476_v52, -inf }
  0x8b   : > { %v574_v60 = vadd.f32 %v573_v7, %v570_v53  ;;  %v482_v61 = vrot.slane %v478_v58, 1  ;;  %v483_v62 = vrot.slane %v479_v59, 1  ;;  %v487_v63 = vrot.slane %v478_v58, 2 }
  0x8c   : > { %v488_v3 = vrot.slane %v479_v59, 2  ;;  %v401_v4 = vmax.f32 %v396_v57, %v399_v51  ;;  %v492_v6 = vrot.slane %v478_v58, 3  ;;  %v493_v8 = vrot.slane %v479_v59, 3 }
  0x8d   : > { %v497_v11 = vrot.slane %v478_v58, 4  ;;  %v484_v12 = vsel %vm265_vm1, %v482_v61, %v483_v62  ;;  %v498_v14 = vrot.slane %v479_v59, 4  ;;  %v502_v7 = vrot.slane %v478_v58, 5 }
  0x8e   : > { %v489_v13 = vsel %vm271_vm2, %v487_v63, %v488_v3  ;;  %v406_v15 = vmax.f32 %v401_v4, %v404_v36  ;;  %v486_v16 = vmax.f32 %v478_v58, %v484_v12  ;;  %v503_v18 = vrot.slane %v479_v59, 5 }
  0x8f   : > { %v770_v21 = vstv %s1869_s22  ;;  %v494_v22 = vsel %vm277_vm3, %v492_v6, %v493_v8  ;;  %v507_v23 = vrot.slane %v478_v58, 6  ;;  %v508_v24 = vrot.slane %v479_v59, 6  ;;  %s1940_s22 = sld [smem:[#allocation7 + $0x87]] }
  0x90   : > { %v578_v25 = vadd.f32 %v1861_v19, %v574_v60  ;;  %408 = vrot.lane.b32.xlu0 %v406_v15, %s1495_s28  ;;  %v491_v26 = vmax.f32 %v486_v16, %v489_v13  ;;  %v499_v27 = vsel %vm283_vm4, %v497_v11, %v498_v14  ;;  %v764_v28 = vadd.f32 %v763_v55, %v760_v54 }
  0x91   : > { %v774_v29 = vstv %s1877_s5  ;;  %v504_v30 = vsel %vm260_vm0, %v502_v7, %v503_v18  ;;  %v771_v33 = vmul.f32 %v770_v21, %v1717_v5  ;;  %v778_v34 = vstv %s1882_s6  ;;  %s1942_s5 = sld [smem:[#allocation7 + $0x107]] }
  0x92   : > { %v579_v32 = vmax.f32 %v578_v25, 0.0  ;;  %v496_v31 = vmax.f32 %v491_v26, %v494_v22  ;;  %v509_v19 = vsel %vm294_vm5, %v507_v23, %v508_v24  ;;  %v768_v35 = vadd.f32 %v767_v56, %v764_v28  ;;  %s1948_s6 = sld [smem:[#allocation7 + $0x187]] }
  0x93   : > { %v782_v37 = vstv %s1886_s7  ;;  %v775_v39 = vmul.f32 %v774_v29, %v1725_v9  ;;  %v779_v40 = vmul.f32 %v778_v34, %v1728_v10  ;;  %v786_v43 = vstv %s1888_s8  ;;  %s1952_s7 = sld [smem:[#allocation7 + $0x207]] }
  0x94   : > { %v581_v38 = vrot.slane %v579_v32, 5  ;;  %v783_v41 = vmul.f32 %v782_v37, %v1744_v17  ;;  %v501_v42 = vmax.f32 %v496_v31, %v499_v27  ;;  %v651_v44 = vstv %s1890_s9  ;;  %s1957_s8 = sld [smem:[#allocation7 + $0x287]] }
  0x95   : > { %v653_v45 = vstv %s1892_s11  ;;  %v772_v48 = vadd.f32 %v771_v33, %v768_v35  ;;  %v657_v56 = vstv %s1899_s20  ;;  %v787_v3 = vmul.f32 %v786_v43, %v1753_v20  ;;  %s1973_s9 = sld [smem:[#allocation7 + $0x307]]  ;;  %s1981_s20 = sld [smem:[#allocation8 + $0x6]] }
  0x96   : > { %v583_v46 = vsel %vm260_vm0, -inf, %v581_v38  ;;  %v584_v47 = vsel %vm260_vm0, %v581_v38, -inf  ;;  %v654_v49 = vmul.f32 %v653_v45, %v1697_v0  ;;  %v506_v50 = vmax.f32 %v501_v42, %v504_v30  ;;  %s1979_s11 = sld [smem:[#allocation7 + $0x387]] }
  0x97   : > { %v587_v51 = vrot.slane %v583_v46, 1  ;;  %v588_v52 = vrot.slane %v584_v47, 1  ;;  %v592_v53 = vrot.slane %v583_v46, 2  ;;  %v593_v36 = vrot.slane %v584_v47, 2 }
  0x98   : > { %v597_v54 = vrot.slane %v583_v46, 3  ;;  %v598_v55 = vrot.slane %v584_v47, 3  ;;  %v511_v57 = vmax.f32 %v506_v50, %v509_v19  ;;  %v602_v59 = vrot.slane %v583_v46, 4 }
  0x99   : > { %v589_v58 = vsel %vm265_vm1, %v587_v51, %v588_v52  ;;  %v603_v60 = vrot.slane %v584_v47, 4  ;;  %v594_v62 = vsel %vm271_vm2, %v592_v53, %v593_v36  ;;  %v607_v63 = vrot.slane %v583_v46, 5 }
  0x9a   : > { %v591_v61 = vmax.f32 %v583_v46, %v589_v58  ;;  %513 = vrot.lane.b32.xlu1 %v511_v57, %s1495_s28  ;;  %v599_v4 = vsel %vm277_vm3, %v597_v54, %v598_v55  ;;  %v608_v6 = vrot.slane %v584_v47, 5  ;;  %v612_v8 = vrot.slane %v583_v46, 6 }
  0x9b   : > { %v776_v11 = vadd.f32 %v775_v39, %v772_v48  ;;  %v613_v13 = vrot.slane %v584_v47, 6  ;;  %v655_v14 = vadd.f32 %v654_v49, %v651_v44  ;;  %v658_v7 = vmul.f32 %v657_v56, %v1702_v1 }
  0x9c   : > { %v596_v12 = vmax.f32 %v591_v61, %v594_v62  ;;  %v604_v15 = vsel %vm283_vm4, %v602_v59, %v603_v60  ;;  %v661_v18 = vstv %s1915_s26  ;;  %v665_v21 = vstv %s1917_s29  ;;  %s1986_s26 = sld [smem:[#allocation7 + $0x6]] }
  0x9d   : > { %v780_v16 = vadd.f32 %v779_v40, %v776_v11  ;;  %v659_v23 = vadd.f32 %v658_v7, %v655_v14  ;;  %v662_v24 = vmul.f32 %v661_v18, %v1709_v2  ;;  %v666_v25 = vmul.f32 %v665_v21, %v1717_v5  ;;  %s1988_s29 = sld [smem:[#allocation7 + $0x86]] }
  0x9e   : > { %v601_v22 = vmax.f32 %v596_v12, %v599_v4  ;;  %v609_v26 = vsel %vm260_vm0, %v607_v63, %v608_v6  ;;  %v669_v28 = vstv %s1922_s23  ;;  %v673_v29 = vstv %s1924_s4  ;;  %s1990_s23 = sld [smem:[#allocation7 + $0x106]] }
  0x9f   : > { %v784_v27 = vadd.f32 %v783_v41, %v780_v16  ;;  %v614_v32 = vsel %vm294_vm5, %v612_v8, %v613_v13  ;;  %v663_v33 = vadd.f32 %v662_v24, %v659_v23  ;;  %v670_v34 = vmul.f32 %v669_v28, %v1725_v9  ;;  %s1996_s4 = sld [smem:[#allocation7 + $0x186]] }
  0xa0   : > { %v606_v30 = vmax.f32 %v601_v22, %v604_v15  ;;  %v674_v19 = vmul.f32 %v673_v29, %v1728_v10  ;;  %v677_v35 = vstv %s1928_s10  ;;  %v681_v37 = vstv %s1930_s17  ;;  %s2008_s10 = sld [smem:[#allocation7 + $0x206]] }
  0xa1   : > { %v788_v31 = vadd.f32 %v787_v3, %v784_v27  ;;  %v667_v39 = vadd.f32 %v666_v25, %v663_v33  ;;  %v966_v40 = vstv %s1934_s30  ;;  %v968_v41 = vstv %s1936_s27  ;;  %s2015_s17 = sld [smem:[#allocation7 + $0x286]] }
  0xa2   : > { %v611_v38 = vmax.f32 %v606_v30, %v609_v26  ;;  %v969_v43 = vmul.f32 %v968_v41, %v1697_v0  ;;  %v972_v44 = vstv %s1940_s22  ;;  %v976_v45 = vstv %s1942_s5  ;;  %s2020_s30 = sld [smem:[#allocation7 + $0x306]]  ;;  %s1496_s22 = smov 126  }
  0xa3   : > { %v789_v42 = vmax.f32 %v788_v31, 0.0  ;;  %v671_v47 = vadd.f32 %v670_v34, %v667_v39  ;;  %v678_v48 = vmul.f32 %v677_v35, %v1744_v17  ;;  %v973_v49 = vmul.f32 %v972_v44, %v1702_v1  ;;  %s2024_s27 = sld [smem:[#allocation7 + $0x386]]  ;;  %s1497_s5 = smov 127  }
  0xa4   : > { %v616_v46 = vmax.f32 %v611_v38, %v614_v32  ;;  %v682_v51 = vmul.f32 %v681_v37, %v1753_v20  ;;  %v970_v52 = vadd.f32 %v969_v43, %v966_v40  ;;  %v980_v53 = vstv %s1948_s6  ;;  %s1498_s6 = smov 124  }
  0xa5   : > { %v791_v50 = vrot.slane %v789_v42, 5  ;;  %v675_v36 = vadd.f32 %v674_v19, %v671_v47  ;;  %v977_v54 = vmul.f32 %v976_v45, %v1709_v2  ;;  %v981_v55 = vmul.f32 %v980_v53, %v1717_v5 }
  0xa6   : > { %618 = vrot.lane.b32.xlu1 %v616_v46, %s1495_s28  ;;  %v984_v56 = vstv %s1952_s7  ;;  %v974_v59 = vadd.f32 %v973_v49, %v970_v52  ;;  %v988_v60 = vstv %s1957_s8  ;;  %v992_v28 = vstv %s1973_s9  ;;  %s1500_s7 = smov 122   ;;  %s1501_s8 = smov 123  }
  0xa7   : > { %v793_v57 = vsel %vm260_vm0, -inf, %v791_v50  ;;  %v794_v58 = vsel %vm260_vm0, %v791_v50, -inf  ;;  %v985_v16 = vmul.f32 %v984_v56, %v1725_v9  ;;  %v989_v18 = vmul.f32 %v988_v60, %v1728_v10  ;;  %s2287_s9 = sshll.u32 %s1666_s19, 6 }
  0xa8   : > { %v797_v61 = vrot.slane %v793_v57, 1  ;;  %v798_v62 = vrot.slane %v794_v58, 1  ;;  %v802_v63 = vrot.slane %v793_v57, 2  ;;  %v803_v3 = vrot.slane %v794_v58, 2 }
  0xa9   : > { %v807_v4 = vrot.slane %v793_v57, 3  ;;  %v808_v6 = vrot.slane %v794_v58, 3  ;;  %v812_v8 = vrot.slane %v793_v57, 4  ;;  %v813_v11 = vrot.slane %v794_v58, 4 }
  0xaa   : > { %v799_v12 = vsel %vm265_vm1, %v797_v61, %v798_v62  ;;  %v804_v13 = vsel %vm271_vm2, %v802_v63, %v803_v3  ;;  %v817_v14 = vrot.slane %v793_v57, 5  ;;  %v818_v7 = vrot.slane %v794_v58, 5 }
  0xab   : > { %v801_v15 = vmax.f32 %v793_v57, %v799_v12  ;;  %v809_v21 = vsel %vm277_vm3, %v807_v4, %v808_v6  ;;  %v814_v22 = vsel %vm283_vm4, %v812_v8, %v813_v11  ;;  %v679_v23 = vadd.f32 %v678_v48, %v675_v36 }
  0xac   : > { %v978_v24 = vadd.f32 %v977_v54, %v974_v59  ;;  %v822_v26 = vrot.slane %v793_v57, 6  ;;  %v823_v27 = vrot.slane %v794_v58, 6  ;;  %v819_v29 = vsel %vm260_vm0, %v817_v14, %v818_v7 }
  0xad   : > { %v806_v25 = vmax.f32 %v801_v15, %v804_v13  ;;  %v683_v30 = vadd.f32 %v682_v51, %v679_v23  ;;  %v996_v33 = vstv %s1979_s11  ;;  %v861_v31 = vstv %s1981_s20  ;;  %s2178_s11 = scalar_lea.vmem [#allocation9], %s2287_s9  ;;  %s1277_s20 = sshll.u32 %s1546_s16, 10 }
  0xae   : > { %v982_v32 = vadd.f32 %v981_v55, %v978_v24  ;;  %v863_v19 = vstv %s1986_s26  ;;  %v867_v35 = vstv %s1988_s29  ;;  %v993_v39 = vmul.f32 %v992_v28, %v1744_v17  ;;  %s1084_s26 = sshll.u32 %s2178_s11, 4  ;;  %s2220_s26 = int_to_ptr.vmem [resolvable:$true] %s1084_s26 }
  0xaf   : > { %v811_v34 = vmax.f32 %v806_v25, %v809_v21  ;;  %v684_v37 = vmax.f32 %v683_v30, 0.0  ;;  %v864_v40 = vmul.f32 %v863_v19, %v1697_v0  ;;  %v824_v42 = vsel %vm294_vm5, %v822_v26, %v823_v27  ;;  %s1414_s16 = scalar_lea.vmem %s2220_s26, 1024 }
  0xb0   : > { %v986_v38 = vadd.f32 %v985_v16, %v982_v32  ;;  %v871_v43 = vstv %s1990_s23  ;;  %v868_v47 = vmul.f32 %v867_v35, %v1702_v1  ;;  %v997_v49 = vmul.f32 %v996_v33, %v1753_v20  ;;  %p1415_p5 = scmp.ne.s32.totalorder %s2220_s26, %s1414_s16 }
  0xb1   : > { %v816_v41 = vmax.f32 %v811_v34, %v814_v22  ;;  %v686_v44 = vrot.slane %v684_v37, 5  ;;  %v865_v46 = vadd.f32 %v864_v40, %v861_v31  ;;  %v875_v50 = vstv %s1996_s4  ;;  %s2218_s4 = scalar_lea.hbm %s2269_s3, %s1277_s20 }
  0xb2   : > { %v990_v45 = vadd.f32 %v989_v18, %v986_v38  ;;  %v872_v53 = vmul.f32 %v871_v43, %v1709_v2  ;;  %v876_v3 = vmul.f32 %v875_v50, %v1717_v5  ;;  %v879_v4 = vstv %s2008_s10  ;;  %s1071_s10 = scalar_lea.sflag [#allocation4], %s1666_s19  ;;  %p1416_p8 = pnand %p1415_p5, %p2288_p0 }
  0xb3   : > { %v821_v48 = vmax.f32 %v816_v41, %v819_v29  ;;  %v688_v51 = vsel %vm260_vm0, -inf, %v686_v44  ;;  %v689_v0 = vsel %vm260_vm0, %v686_v44, -inf  ;;  %v869_v59 = vadd.f32 %v868_v47, %v865_v46 }
  0xb4   : > { %v994_v52 = vadd.f32 %v993_v39, %v990_v45  ;;  %v692_v54 = vrot.slane %v688_v51, 1  ;;  %v693_v55 = vrot.slane %v689_v0, 1  ;;  %v697_v56 = vrot.slane %v688_v51, 2  ;;  %p1417_p10 = pneg %p1416_p8 }
  0xb5   : > { %v826_v36 = vmax.f32 %v821_v48, %v824_v42  ;;  %v698_v57 = vrot.slane %v689_v0, 2  ;;  %v702_v1 = vrot.slane %v688_v51, 3  ;;  %v703_v58 = vrot.slane %v689_v0, 3 }
  0xb6   : > { %v694_v60 = vsel %vm265_vm1, %v692_v54, %v693_v55  ;;  %v707_v61 = vrot.slane %v688_v51, 4  ;;  %v708_v62 = vrot.slane %v689_v0, 4  ;;  %v712_v8 = vrot.slane %v688_v51, 5 }
  0xb7   : > { %828 = vrot.lane.b32.xlu1 %v826_v36, %s1495_s28  ;;  %v696_v2 = vmax.f32 %v688_v51, %v694_v60  ;;  %v699_v63 = vsel %vm271_vm2, %v697_v56, %v698_v57  ;;  %v704_v6 = vsel %vm277_vm3, %v702_v1, %v703_v58  ;;  %v713_v11 = vrot.slane %v689_v0, 5 }
  0xb8   : > { %v998_v12 = vadd.f32 %v997_v49, %v994_v52  ;;  %v717_v14 = vrot.slane %v688_v51, 6  ;;  %v718_v7 = vrot.slane %v689_v0, 6  ;;  %v873_v15 = vadd.f32 %v872_v53, %v869_v59 }
  0xb9   : > { %v701_v13 = vmax.f32 %v696_v2, %v699_v63  ;;  %v709_v16 = vsel %vm283_vm4, %v707_v61, %v708_v62  ;;  %v880_v21 = vmul.f32 %v879_v4, %v1725_v9  ;;  %v883_v22 = vstv %s2015_s17  ;;  %s1502_s17 = smov [#allocation9]  }
  0xba   : > { %v999_v18 = vmax.f32 %v998_v12, 0.0  ;;  %v877_v5 = vadd.f32 %v876_v3, %v873_v15  ;;  %v714_v24 = vsel %vm260_vm0, %v712_v8, %v713_v11  ;;  %v719_v27 = vsel %vm294_vm5, %v717_v14, %v718_v7 }
  0xbb   : > { %v706_v23 = vmax.f32 %v701_v13, %v704_v6  ;;  %v884_v28 = vmul.f32 %v883_v22, %v1728_v10  ;;  %v887_v29 = vstv %s2020_s30  ;;  %v891_v34 = vstv %s2024_s27  ;;  %s1418_s30 = sshll.u32 %s1502_s17, 4  ;;  %s1419_s30 = int_to_ptr.vmem [resolvable:$false] %s1418_s30 }
  0xbc   : > { %v1001_v25 = vrot.slane %v999_v18, 5  ;;  %v881_v33 = vadd.f32 %v880_v21, %v877_v5  ;;  %v888_v40 = vmul.f32 %v887_v29, %v1744_v17  ;;  %v892_v46 = vmul.f32 %v891_v34, %v1753_v20  ;;  %s1420_s27 = scalar_lea.vmem %s1419_s30, 2048  ;;  %p1421_p6 = scmp.lt.s32.totalorder %s2220_s26, %s1419_s30 }
  0xbd   : > { %v711_v26 = vmax.f32 %v706_v23, %v709_v16  ;;  %p1422_p12 = scmp.lt.s32.totalorder %s1420_s27, %s1414_s16 }
  0xbe   : > { %v1003_v30 = vsel %vm260_vm0, -inf, %v1001_v25  ;;  %v1004_v32 = vsel %vm260_vm0, %v1001_v25, -inf  ;;  %v885_v50 = vadd.f32 %v884_v28, %v881_v33 }
  0xbf   : > { %v716_v31 = vmax.f32 %v711_v26, %v714_v24  ;;  %v1007_v9 = vrot.slane %v1003_v30, 1  ;;  %v1008_v19 = vrot.slane %v1004_v32, 1  ;;  %v1012_v35 = vrot.slane %v1003_v30, 2  ;;  %p1423_p7 = por %p1422_p12, %p1421_p6 }
  0xc0   : > { %v1013_v37 = vrot.slane %v1004_v32, 2  ;;  %v1017_v38 = vrot.slane %v1003_v30, 3  ;;  %v1018_v39 = vrot.slane %v1004_v32, 3  ;;  %v1022_v10 = vrot.slane %v1003_v30, 4 }
  0xc1   : > { %v721_v41 = vmax.f32 %v716_v31, %v719_v27  ;;  %v1009_v42 = vsel %vm265_vm1, %v1007_v9, %v1008_v19  ;;  %v1023_v43 = vrot.slane %v1004_v32, 4  ;;  %v1027_v48 = vrot.slane %v1003_v30, 5  ;;  %p1424_p9 = pnand %p1423_p7, %p1417_p10 }
  0xc2   : > { %v1011_v44 = vmax.f32 %v1003_v30, %v1009_v42  ;;  %v1014_v45 = vsel %vm271_vm2, %v1012_v35, %v1013_v37  ;;  %v1019_v47 = vsel %vm277_vm3, %v1017_v38, %v1018_v39  ;;  %v1028_v49 = vrot.slane %v1004_v32, 5 }
  0xc3   : > { %723 = vrot.lane.b32.xlu0 %v721_v41, %s1495_s28  ;;  %v1024_v17 = vsel %vm283_vm4, %v1022_v10, %v1023_v43  ;;  %v1032_v0 = vrot.slane %v1003_v30, 6  ;;  %v1033_v52 = vrot.slane %v1004_v32, 6  ;;  %v889_v53 = vadd.f32 %v888_v40, %v885_v50 }
  0xc4   : > { %v1016_v51 = vmax.f32 %v1011_v44, %v1014_v45  ;;  %v1029_v54 = vsel %vm260_vm0, %v1027_v48, %v1028_v49 }
  0xc5   : > { %v893_v55 = vadd.f32 %v892_v46, %v889_v53  ;;  %v1034_v20 = vsel %vm294_vm5, %v1032_v0, %v1033_v52 }
  0xc6   : > { %v1021_v36 = vmax.f32 %v1016_v51, %v1019_v47 }
  0xc7   : > { %v894_v57 = vmax.f32 %v893_v55, 0.0 }
  0xc8   : > { %v1026_v56 = vmax.f32 %v1021_v36, %v1024_v17 }
  0xc9   : > { %v896_v58 = vrot.slane %v894_v57, 5 }
  0xca   : > { %v1031_v1 = vmax.f32 %v1026_v56, %v1029_v54 }
  0xcb   : > { %v898_v60 = vsel %vm260_vm0, -inf, %v896_v58  ;;  %v899_v61 = vsel %vm260_vm0, %v896_v58, -inf }
  0xcc   : > { %v1036_v59 = vmax.f32 %v1031_v1, %v1034_v20  ;;  %v902_v62 = vrot.slane %v898_v60, 1  ;;  %v903_v2 = vrot.slane %v899_v61, 1  ;;  %v907_v63 = vrot.slane %v898_v60, 2 }
  0xcd   : > { %v908_v3 = vrot.slane %v899_v61, 2  ;;  %v912_v4 = vrot.slane %v898_v60, 3  ;;  %v913_v6 = vrot.slane %v899_v61, 3  ;;  %v917_v12 = vrot.slane %v898_v60, 4 }
  0xce   : > { %1038 = vrot.lane.b32.xlu1 %v1036_v59, %s1495_s28  ;;  %v904_v8 = vsel %vm265_vm1, %v902_v62, %v903_v2  ;;  %v918_v13 = vrot.slane %v899_v61, 4  ;;  %v922_v15 = vrot.slane %v898_v60, 5  ;;  %v923_v16 = vrot.slane %v899_v61, 5 }
  0xcf   : > { %v909_v11 = vsel %vm271_vm2, %v907_v63, %v908_v3  ;;  %v906_v14 = vmax.f32 %v898_v60, %v904_v8  ;;  %v914_v7 = vsel %vm277_vm3, %v912_v4, %v913_v6  ;;  %v927_v22 = vrot.slane %v898_v60, 6 }
  0xd0   : > { %v919_v21 = vsel %vm283_vm4, %v917_v12, %v918_v13  ;;  %v928_v23 = vrot.slane %v899_v61, 6  ;;  %v924_v24 = vsel %vm260_vm0, %v922_v15, %v923_v16 }
  0xd1   : > { %v911_v18 = vmax.f32 %v906_v14, %v909_v11 }
  0xd2   : > { %v929_v26 = vsel %vm294_vm5, %v927_v22, %v928_v23 }
  0xd3   : > { %v916_v5 = vmax.f32 %v911_v18, %v914_v7 }
  0xd5   : > { %v921_v25 = vmax.f32 %v916_v5, %v919_v21 }
  0xd7   : > { %v926_v27 = vmax.f32 %v921_v25, %v924_v24 }
  0xd9   : > { %v931_v28 = vmax.f32 %v926_v27, %v929_v26 }
  0xdb   : > { %933 = vrot.lane.b32.xlu0 %v931_v28, %s1495_s28  ;;  %s1499_s28 = smov 125  }
  0xfb   : > { %v302_v29 = vpop.permute.xlu0 %301 }
  0xfc   : > { %v305_v30 = vsel %vm304_vm6, -inf, %v302_v29 }
  0xfd   : > { %v2061_v32 = vsel %vm306_vm7, %v305_v30, -inf }
  0xfe   : > { %313 = vrot.lane.b32.xlu1 %v2061_v32, %s1496_s22  ;;  %309 = vrot.lane.b32.xlu0 %v2061_v32, %s1497_s5 }
 0x102   : > { %321 = vrot.lane.b32.xlu1 %v2061_v32, %s1498_s6  ;;  %317 = vrot.lane.b32.xlu0 %v2061_v32, %s1499_s28  ;;  %v409_v33 = vpop.permute.xlu0 %408 }
 0x103   : > { %v411_v34 = vsel %vm304_vm6, -inf, %v409_v33 }
 0x104   : > { %v2077_v31 = vsel %vm306_vm7, %v411_v34, -inf }
 0x106   : > { %329 = vrot.lane.b32.xlu1 %v2061_v32, %s1500_s7  ;;  %325 = vrot.lane.b32.xlu0 %v2061_v32, %s1501_s8 }
 0x10a   : > { %418 = vrot.lane.b32.xlu1 %v2077_v31, %s1496_s22  ;;  %414 = vrot.lane.b32.xlu0 %v2077_v31, %s1497_s5 }
 0x10c   : > { %v514_v9 = vpop.permute.xlu1 %513 }
 0x10d   : > { %v516_v19 = vsel %vm304_vm6, -inf, %v514_v9 }
 0x10e   : > { %426 = vrot.lane.b32.xlu1 %v2077_v31, %s1498_s6  ;;  %422 = vrot.lane.b32.xlu0 %v2077_v31, %s1499_s28  ;;  %v2093_v35 = vsel %vm306_vm7, %v516_v19, -inf }
 0x112   : > { %434 = vrot.lane.b32.xlu1 %v2077_v31, %s1500_s7  ;;  %430 = vrot.lane.b32.xlu0 %v2077_v31, %s1501_s8 }
 0x116   : > { %519 = vrot.lane.b32.xlu0 %v2093_v35, %s1497_s5 }
 0x118   : > { %v619_v37 = vpop.permute.xlu1 %618 }
 0x119   : > { %v621_v38 = vsel %vm304_vm6, -inf, %v619_v37 }
 0x11a   : > { %v2099_v39 = vsel %vm306_vm7, %v621_v38, -inf }
 0x11b   : > { %624 = vrot.lane.b32.xlu1 %v2099_v39, %s1497_s5 }
 0x129   : > { %v829_v40 = vpop.permute.xlu1 %828 }
 0x12a   : > { %v831_v41 = vsel %vm304_vm6, -inf, %v829_v40 }
 0x12b   : > { %v2105_v42 = vsel %vm306_vm7, %v831_v41, -inf }
 0x12c   : > { %834 = vrot.lane.b32.xlu1 %v2105_v42, %s1497_s5 }
 0x135   : > { %v724_v10 = vpop.permute.xlu0 %723 }
 0x136   : > { %v726_v43 = vsel %vm304_vm6, -inf, %v724_v10 }
 0x137   : > { %v2111_v44 = vsel %vm306_vm7, %v726_v43, -inf }
 0x138   : > { %729 = vrot.lane.b32.xlu0 %v2111_v44, %s1497_s5 }
 0x140   : > { %v1039_v45 = vpop.permute.xlu1 %1038 }
 0x141   : > { %v1041_v46 = vsel %vm304_vm6, -inf, %v1039_v45 }
 0x142   : > { %v2117_v47 = vsel %vm306_vm7, %v1041_v46, -inf }
 0x143   : > { %1044 = vrot.lane.b32.xlu1 %v2117_v47, %s1497_s5 }
 0x147   : > { %628 = vrot.lane.b32.xlu1 %v2099_v39, %s1496_s22 }
 0x14b   : > { %838 = vrot.lane.b32.xlu1 %v2105_v42, %s1496_s22 }
 0x14d   : > { %v934_v48 = vpop.permute.xlu0 %933 }
 0x14e   : > { %v936_v49 = vsel %vm304_vm6, -inf, %v934_v48 }
 0x14f   : > { %1048 = vrot.lane.b32.xlu1 %v2117_v47, %s1496_s22  ;;  %v2129_v50 = vsel %vm306_vm7, %v936_v49, -inf }
 0x150   : > { %939 = vrot.lane.b32.xlu0 %v2129_v50, %s1497_s5 }
 0x153   : > { %632 = vrot.lane.b32.xlu1 %v2099_v39, %s1499_s28 }
 0x154   : > { %523 = vrot.lane.b32.xlu0 %v2093_v35, %s1496_s22 }
 0x157   : > { %842 = vrot.lane.b32.xlu1 %v2105_v42, %s1499_s28 }
 0x158   : > { %733 = vrot.lane.b32.xlu0 %v2111_v44, %s1496_s22 }
 0x15b   : > { %1052 = vrot.lane.b32.xlu1 %v2117_v47, %s1499_s28 }
 0x15c   : > { %943 = vrot.lane.b32.xlu0 %v2129_v50, %s1496_s22 }
 0x15f   : > { %636 = vrot.lane.b32.xlu1 %v2099_v39, %s1498_s6 }
 0x160   : > { %527 = vrot.lane.b32.xlu0 %v2093_v35, %s1499_s28 }
 0x163   : > { %846 = vrot.lane.b32.xlu1 %v2105_v42, %s1498_s6 }
 0x164   : > { %737 = vrot.lane.b32.xlu0 %v2111_v44, %s1499_s28 }
 0x167   : > { %1056 = vrot.lane.b32.xlu1 %v2117_v47, %s1498_s6 }
 0x168   : > { %947 = vrot.lane.b32.xlu0 %v2129_v50, %s1499_s28 }
 0x16b   : > { %640 = vrot.lane.b32.xlu1 %v2099_v39, %s1501_s8 }
 0x16c   : > { %531 = vrot.lane.b32.xlu0 %v2093_v35, %s1498_s6 }
 0x16f   : > { %850 = vrot.lane.b32.xlu1 %v2105_v42, %s1501_s8 }
 0x170   : > { %v314_v51 = vpop.permute.xlu1 %313  ;;  %v310_v17 = vpop.permute.xlu0 %309  ;;  %741 = vrot.lane.b32.xlu0 %v2111_v44, %s1498_s6 }
 0x171   : > { %v312_v0 = vmax.f32 %v2061_v32, %v310_v17 }
 0x173   : > { %v316_v52 = vmax.f32 %v312_v0, %v314_v51  ;;  %1060 = vrot.lane.b32.xlu1 %v2117_v47, %s1501_s8 }
 0x174   : > { %v322_v53 = vpop.permute.xlu1 %321  ;;  %v318_v36 = vpop.permute.xlu0 %317  ;;  %951 = vrot.lane.b32.xlu0 %v2129_v50, %s1498_s6 }
 0x175   : > { %v320_v54 = vmax.f32 %v316_v52, %v318_v36 }
 0x177   : > { %v324_v55 = vmax.f32 %v320_v54, %v322_v53  ;;  %644 = vrot.lane.b32.xlu1 %v2099_v39, %s1500_s7 }
 0x178   : > { %v330_v56 = vpop.permute.xlu1 %329  ;;  %v326_v20 = vpop.permute.xlu0 %325  ;;  %535 = vrot.lane.b32.xlu0 %v2093_v35, %s1501_s8 }
 0x179   : > { %v328_v57 = vmax.f32 %v324_v55, %v326_v20 }
 0x17b   : > { %v332_v1 = vmax.f32 %v328_v57, %v330_v56  ;;  %854 = vrot.lane.b32.xlu1 %v2105_v42, %s1500_s7 }
 0x17c   : > { %v419_v58 = vpop.permute.xlu1 %418  ;;  %v415_v59 = vpop.permute.xlu0 %414  ;;  %745 = vrot.lane.b32.xlu0 %v2111_v44, %s1501_s8 }
 0x17d   : > { %334 = vst.msk [vmem:[%s2178_s11] sm:$0xff] %vm333_vm8, %v332_v1  ;;  %v417_v60 = vmax.f32 %v2077_v31, %v415_v59 }
 0x17f   : > { %v421_v61 = vmax.f32 %v417_v60, %v419_v58  ;;  %1064 = vrot.lane.b32.xlu1 %v2117_v47, %s1500_s7 }
 0x180   : > { %v427_v62 = vpop.permute.xlu1 %426  ;;  %v423_v2 = vpop.permute.xlu0 %422  ;;  %955 = vrot.lane.b32.xlu0 %v2129_v50, %s1501_s8 }
 0x181   : > { %v425_v63 = vmax.f32 %v421_v61, %v423_v2 }
 0x183   : > { %v429_v3 = vmax.f32 %v425_v63, %v427_v62 }
 0x184   : > { %v431_v4 = vpop.permute.xlu0 %430  ;;  %v435_v8 = vpop.permute.xlu1 %434  ;;  %539 = vrot.lane.b32.xlu0 %v2093_v35, %s1500_s7 }
 0x185   : > { %v433_v6 = vmax.f32 %v429_v3, %v431_v4 }
 0x187   : > { %v437_v11 = vmax.f32 %v433_v6, %v435_v8 }
 0x188   : > { %749 = vrot.lane.b32.xlu0 %v2111_v44, %s1500_s7  ;;  %v520_v7 = vpop.permute.xlu0 %519 }
 0x189   : > { %1210 = vst.msk [vmem:[%s2178_s11 + $0x8] sm:$0xff] %vm333_vm8, %v437_v11  ;;  %v522_v57 = vmax.f32 %v2093_v35, %v520_v7 }
 0x18c   : > { %959 = vrot.lane.b32.xlu0 %v2129_v50, %s1500_s7 }
 0x18d   : > { %v625_v12 = vpop.permute.xlu1 %624 }
 0x18e   : > { %v627_v9 = vmax.f32 %v2099_v39, %v625_v12 }
 0x19e   : > { %v835_v13 = vpop.permute.xlu1 %834 }
 0x19f   : > { %v837_v40 = vmax.f32 %v2105_v42, %v835_v13 }
 0x1aa   : > { %v730_v18 = vpop.permute.xlu0 %729 }
 0x1ab   : > { %v732_v61 = vmax.f32 %v2111_v44, %v730_v18 }
 0x1b5   : > { %v1045_v14 = vpop.permute.xlu1 %1044 }
 0x1b6   : > { %v1047_v48 = vmax.f32 %v2117_v47, %v1045_v14 }
 0x1b9   : > { %v629_v15 = vpop.permute.xlu1 %628 }
 0x1ba   : > { %v631_v38 = vmax.f32 %v627_v9, %v629_v15 }
 0x1bd   : > { %v839_v16 = vpop.permute.xlu1 %838 }
 0x1be   : > { %v841_v45 = vmax.f32 %v837_v40, %v839_v16 }
 0x1c1   : > { %v1049_v21 = vpop.permute.xlu1 %1048 }
 0x1c2   : > { %v940_v22 = vpop.permute.xlu0 %939  ;;  %v1051_v52 = vmax.f32 %v1047_v48, %v1049_v21 }
 0x1c3   : > { %v942_v35 = vmax.f32 %v2129_v50, %v940_v22 }
 0x1c5   : > { %v633_v23 = vpop.permute.xlu1 %632 }
 0x1c6   : > { %v524_v5 = vpop.permute.xlu0 %523  ;;  %v635_v41 = vmax.f32 %v631_v38, %v633_v23 }
 0x1c7   : > { %v526_v58 = vmax.f32 %v522_v57, %v524_v5 }
 0x1c9   : > { %v843_v24 = vpop.permute.xlu1 %842 }
 0x1ca   : > { %v734_v25 = vpop.permute.xlu0 %733  ;;  %v845_v49 = vmax.f32 %v841_v45, %v843_v24 }
 0x1cb   : > { %v736_v63 = vmax.f32 %v732_v61, %v734_v25 }
 0x1cd   : > { %v1053_v26 = vpop.permute.xlu1 %1052 }
 0x1ce   : > { %v944_v27 = vpop.permute.xlu0 %943  ;;  %v1055_v36 = vmax.f32 %v1051_v52, %v1053_v26 }
 0x1cf   : > { %v946_v11 = vmax.f32 %v942_v35, %v944_v27 }
 0x1d1   : > { %v637_v28 = vpop.permute.xlu1 %636 }
 0x1d2   : > { %v528_v29 = vpop.permute.xlu0 %527  ;;  %v639_v46 = vmax.f32 %v635_v41, %v637_v28 }
 0x1d3   : > { %v530_v62 = vmax.f32 %v526_v58, %v528_v29 }
 0x1d5   : > { %v847_v30 = vpop.permute.xlu1 %846 }
 0x1d6   : > { %v738_v32 = vpop.permute.xlu0 %737  ;;  %v849_v39 = vmax.f32 %v845_v49, %v847_v30 }
 0x1d7   : > { %v740_v4 = vmax.f32 %v736_v63, %v738_v32 }
 0x1d9   : > { %v1057_v33 = vpop.permute.xlu1 %1056 }
 0x1da   : > { %v948_v34 = vpop.permute.xlu0 %947  ;;  %v1059_v56 = vmax.f32 %v1055_v36, %v1057_v33 }
 0x1db   : > { %v950_v44 = vmax.f32 %v946_v11, %v948_v34 }
 0x1dd   : > { %v641_v31 = vpop.permute.xlu1 %640 }
 0x1de   : > { %v532_v19 = vpop.permute.xlu0 %531  ;;  %v643_v17 = vmax.f32 %v639_v46, %v641_v31 }
 0x1df   : > { %v534_v3 = vmax.f32 %v530_v62, %v532_v19 }
 0x1e1   : > { %v851_v37 = vpop.permute.xlu1 %850 }
 0x1e2   : > { %v742_v10 = vpop.permute.xlu0 %741  ;;  %v853_v42 = vmax.f32 %v849_v39, %v851_v37 }
 0x1e3   : > { %v744_v12 = vmax.f32 %v740_v4, %v742_v10 }
 0x1e5   : > { %v1061_v43 = vpop.permute.xlu1 %1060 }
 0x1e6   : > { %v952_v51 = vpop.permute.xlu0 %951  ;;  %v1063_v1 = vmax.f32 %v1059_v56, %v1061_v43 }
 0x1e7   : > { %v954_v15 = vmax.f32 %v950_v44, %v952_v51 }
 0x1e9   : > { %v645_v0 = vpop.permute.xlu1 %644 }
 0x1ea   : > { %v647_v53 = vmax.f32 %v643_v17, %v645_v0  ;;  %v536_v54 = vpop.permute.xlu0 %535 }
 0x1eb   : > { %v538_v6 = vmax.f32 %v534_v3, %v536_v54 }
 0x1ec   : > { %1230 = vst.msk [vmem:[%s2178_s11 + $0x18] sm:$0xff] %vm333_vm8, %v647_v53 }
 0x1ed   : > { %v855_v55 = vpop.permute.xlu1 %854 }
 0x1ee   : > { %v857_v20 = vmax.f32 %v853_v42, %v855_v55  ;;  %v746_v47 = vpop.permute.xlu0 %745 }
 0x1ef   : > { %v748_v14 = vmax.f32 %v744_v12, %v746_v47 }
 0x1f0   : > { %1250 = vst.msk [vmem:[%s2178_s11 + $0x28] sm:$0xff] %vm333_vm8, %v857_v20 }
 0x1f1   : > { %v1065_v59 = vpop.permute.xlu1 %1064 }
 0x1f2   : > { %v1067_v60 = vmax.f32 %v1063_v1, %v1065_v59  ;;  %v956_v2 = vpop.permute.xlu0 %955 }
 0x1f3   : > { %v958_v50 = vmax.f32 %v954_v15, %v956_v2 }
 0x1f4   : > { %1270 = vst.msk [vmem:[%s2178_s11 + $0x38] sm:$0xff] %vm333_vm8, %v1067_v60 }
 0x1f6   : > { %v540_v8 = vpop.permute.xlu0 %539 }
 0x1f7   : > { %v542_v13 = vmax.f32 %v538_v6, %v540_v8 }
 0x1f9   : > { %1220 = vst.msk [vmem:[%s2178_s11 + $0x10] sm:$0xff] %vm333_vm8, %v542_v13 }
 0x1fa   : > { %v750_v7 = vpop.permute.xlu0 %749 }
 0x1fb   : > { %v752_v16 = vmax.f32 %v748_v14, %v750_v7 }
 0x1fd   : > { %1240 = vst.msk [vmem:[%s2178_s11 + $0x20] sm:$0xff] %vm333_vm8, %v752_v16 }
 0x1fe   : > { %v960_v18 = vpop.permute.xlu0 %959 }
 0x1ff   : > { %v962_v21 = vmax.f32 %v958_v50, %v960_v18 }
 0x201   : > { %1260 = vst.msk [vmem:[%s2178_s11 + $0x30] sm:$0xff] %vm333_vm8, %v962_v21 }
 0x202   : > { %1427 = shalt.err (!%p1424_p9)
}
 0x203   : > { %s1428_s22 = scalar_lea.hbm %s2218_s4, 1024  ;;  %s1432_s28 = scalar_lea.hbm %s2269_s3, 2048 }
 0x204   : > { %p1429_p2 = scmp.ne.s32.totalorder %s2218_s4, %s1428_s22  ;;  %p1433_p13 = scmp.lt.u32.totalorder %s2218_s4, %s2269_s3 }
 0x205   : > { %p1434_p1 = scmp.lt.u32.totalorder %s1432_s28, %s1428_s22  ;;  %p1436_p5 = scmp.lt.u32.totalorder %s1428_s22, %s2218_s4 }
 0x206   : > { %p1430_p11 = pnand %p1429_p2, %p2288_p0 }
 0x207   : > { %p1435_p4 = por %p1434_p1, %p1433_p13 }
 0x208   : > { %p1431_p3 = pneg %p1430_p11 }
 0x209   : > { %p1437_p8 = por %p1436_p5, %p1435_p4 }
 0x20b   : > { %p1438_p10 = pnand %p1437_p8, %p1431_p3 }
 0x20d   : > { %1441 = shalt.err (!%p1438_p10)
}
 0x20e   : > { %s1503_s9 = smov 128   ;;  %s1504_s11 = smov 8  }
 0x20f   : > { %1288 = dma.vmem_to_hbm [thread:$0]  (%p2288_p0), %s2220_s26, 1024, %s2218_s4, %s1071_s10, %s1503_s9, %s1503_s9, %s1504_s11  }
 0x210 PF: > { %s1099_s20 = sand.u32 1, %s1476_s12   ;;  %p2289_p6 = scmp.ne.s32.totalorder %s2277_s25, 0 }
 0x211   : > { %p2290_p12 = scmp.ge.s32.totalorder %s1488_s15, 2  ;;  %s1100_s29 = scalar_lea.sflag [#allocation4], %s1099_s20 }
 0x213   : > { %p1302_p7 = pnand %p2290_p12, %p2289_p6 }
 0x215   : > { %1471 = dma.done.wait (!%p1302_p7), %s1100_s29, 1024  }
 0x216   : > { %1473 = vsyncadd (!%p1302_p7), %s1100_s29, 4294966272  ;;  %p18_p9 = scmp.ge.s32.totalorder %s1550_s18, 4   ;;  %s2291_s12 = smov %s1480_s13 }
 0x217   : > { %s2292_s13 = smov %s1484_s14  ;;  %s2293_s14 = smov %s1562_s21 }
 0x218   : > { %s2294_s15 = smov %s1550_s18  ;;  %20 = sbr.rel (!%p18_p9) target bundleno = 7 (0x7), region = 94 }
 0x21f   :  { %1105 = vsyncpa [#allocation3], 1 }
 0x220   :  { %1107 = vsyncpa [#allocation3 + $0x1], 1 }
 0x221   :  { %1108 = vsyncpa [#allocation4], 1 }
 0x222   :  { %1110 = vsyncpa [#allocation4 + $0x1], 1 }
 0x223   :  { %1111 = vsyncpa [#allocation5], 1 }
 0x224   :  { %1113 = vsyncpa [#allocation5 + $0x1], 1 }
 0x225   :  { %1114 = vsyncpa [#allocation6], 1 }
 0x226   :  { %1116 = vsyncpa [#allocation6 + $0x1], 1 }

</bundles_post_ra>
